<compile_context>
chip_gen: v7x
topology: tpu7x:2x2x1
jax: 0.10.0
libtpu: 0.0.40
codegen_flags: <defaults>
</compile_context>

<pallas_src>
import functools

import jax
import jax.numpy as jnp
from jax import lax
from jax.experimental import pallas as pl
from jax.experimental.pallas import tpu as pltpu

LN_EPS = 1e-5  # PyTorch nn.LayerNorm default eps
HIGHEST = jax.lax.Precision.HIGHEST


def _cross_attn_kernel(xy_ref, wqkv_ref, bqkv_ref, wm_ref, bm_ref, out_ref,
                       *, bsz, lx, ly, d):
    """Whole problem in one invocation.

    xy_ref  : (B*Lx + B*Ly, D)  rows = [all x rows ; all y rows]
    wqkv_ref: (D, 6D) = [wqx*s | wkx | wvx | wqy*s | wky | wvy]
    bqkv_ref: (1, 6D)   matching fused bias (q biases pre-scaled)
    wm_ref  : (D, DP)   merge Linear, columns zero-padded to lane width DP
    bm_ref  : (1, DP)
    out_ref : (B*(Lx+Ly), DP)  rows ordered [b0: x-half, y-half, b1: ...]
    """
    nx = bsz * lx

    # One fat MXU push: every row (x and y) against all six projections.
    qkv = jnp.dot(xy_ref[...], wqkv_ref[...],
                  precision=HIGHEST, preferred_element_type=jnp.float32)
    qkv = qkv + bqkv_ref[...]

    contract_last = (((1,), (1,)), ((), ()))  # q @ k^T without materializing k.T

    def scores(q, k):
        return lax.dot_general(q, k, contract_last, precision=HIGHEST,
                               preferred_element_type=jnp.float32)

    def softmax(s):
        p = jnp.exp(s - jnp.max(s, axis=-1, keepdims=True))
        return p / jnp.sum(p, axis=-1, keepdims=True)  # exact divide

    def layer_norm(z):  # elementwise_affine=False -> no gamma/beta
        mu = jnp.mean(z, axis=-1, keepdims=True)
        var = jnp.mean((z - mu) * (z - mu), axis=-1, keepdims=True)
        return (z - mu) * lax.rsqrt(var + LN_EPS)

    # Column mask for the fused (o1, o2) dual softmax.  Hoisted out of the
    # batch loop (JAX does not CSE broadcast_in_dim/iota).
    col = lax.broadcasted_iota(jnp.int32, (lx, lx + ly), 1)
    in_x = col < lx

    h_pieces = []
    for b in range(bsz):  # B is tiny and static
        rx = slice(b * lx, (b + 1) * lx)
        ry = slice(nx + b * ly, nx + (b + 1) * ly)
        qx, kx, vx = qkv[rx, 0:d], qkv[rx, d:2 * d], qkv[rx, 2 * d:3 * d]
        qy, ky, vy = qkv[ry, 3 * d:4 * d], qkv[ry, 4 * d:5 * d], qkv[ry, 5 * d:6 * d]

        # Sublane-aligned stacks (lx, ly are multiples of 8 here).
        kxy = jnp.concatenate([kx, ky], axis=0)   # (lx+ly, d)
        vxy = jnp.concatenate([vx, vy], axis=0)   # (lx+ly, d)

        # o1 + o2: shared query qx -> ONE score matmul + ONE PV matmul.
        # The two softmaxes (over kx columns / ky columns) are evaluated on the
        # single score slab with per-half max/sum selected by the column mask.
        s12 = scores(qx, kxy)                                       # (lx, lx+ly)
        m1 = jnp.max(jnp.where(in_x, s12, -jnp.inf), axis=-1, keepdims=True)
        m2 = jnp.max(jnp.where(in_x, -jnp.inf, s12), axis=-1, keepdims=True)
        e = jnp.exp(s12 - jnp.where(in_x, m1, m2))
        z1 = jnp.sum(jnp.where(in_x, e, 0.0), axis=-1, keepdims=True)
        z2 = jnp.sum(jnp.where(in_x, 0.0, e), axis=-1, keepdims=True)
        p12 = e / jnp.where(in_x, z1, z2)
        o12 = jnp.dot(p12, vxy, precision=HIGHEST,
                      preferred_element_type=jnp.float32)           # = o1 + o2

        # o3 + o4: different queries (qy vs ky, as written in the module), so
        # two small score matmuls; PVs stay separate to avoid a lane concat.
        p3 = softmax(scores(qy, kx))          # softmax(qy kx^T / sqrt d)
        p4 = softmax(scores(ky, qy))          # softmax(ky qy^T / sqrt d)
        o34 = (jnp.dot(p3, vx, precision=HIGHEST, preferred_element_type=jnp.float32)
               + jnp.dot(p4, vy, precision=HIGHEST, preferred_element_type=jnp.float32))

        h_pieces.append(layer_norm(o12))      # x-half rows of this batch
        h_pieces.append(layer_norm(o34))      # y-half rows of this batch

    # Assemble the hidden slab as SSA values (no VMEM round trip), run the
    # merge Linear over all rows in one MXU push, ELU, then a SINGLE
    # lane-dense store to out_ref.
    h = jnp.concatenate(h_pieces, axis=0)                           # (rows, D)
    m = jnp.dot(h, wm_ref[...], precision=HIGHEST,
                preferred_element_type=jnp.float32) + bm_ref[...]   # (rows, DP)
    # ELU (alpha=1); exp argument clamped so the unselected branch never
    # produces inf.  Padded columns evaluate to 0 and are sliced off outside.
    out_ref[...] = jnp.where(m > 0.0, m,
                             jnp.exp(jnp.minimum(m, 0.0)) - 1.0).astype(out_ref.dtype)


def prepare_params(w_stack, b_stack, wm, bm, d, lane=128):
    """One-time weight preparation (model-load time).

    w_stack: [6, D, D] with projection = inp @ W[i] + b[i], in order
             (qx, kx, vx, qy, ky, vy); b_stack: [6, D]; wm: [D, D]; bm: [1, D].

    * Fuses all six projections into one [D, 6D] matmul and folds 1/sqrt(d)
      into the two query-side projections (qx, qy): each of the four score
      matrices (qx kx^T, qx ky^T, qy kx^T, ky qy^T) then carries the scale
      exactly once.
    * Zero-pads the merge Linear's output columns to the 128-lane width so the
      kernel's only store to out_ref is an unmasked full-lane store.
    """
    scale = float(d) ** (-0.5)
    wqkv = jnp.concatenate(
        [w_stack[0] * scale, w_stack[1], w_stack[2],
         w_stack[3] * scale, w_stack[4], w_stack[5]], axis=1)          # (D, 6D)
    bqkv = jnp.concatenate(
        [b_stack[0] * scale, b_stack[1], b_stack[2],
         b_stack[3] * scale, b_stack[4], b_stack[5]])[None, :]         # (1, 6D)
    dp = ((d + lane - 1) // lane) * lane
    wm_pad = jnp.zeros((d, dp), wm.dtype).at[:, :d].set(wm)
    bm_pad = jnp.zeros((1, dp), wm.dtype).at[:, :d].set(bm.reshape(1, d))
    return wqkv, bqkv, wm_pad, bm_pad


def cross_attention_layer(x, y, wqkv, bqkv, wm_pad, bm_pad):
    """x: [B, Lx, D], y: [B, Ly, D] -> [B, Lx+Ly, D]."""
    bsz, lx, d = x.shape
    _, ly, _ = y.shape
    rows = bsz * (lx + ly)
    dp = wm_pad.shape[1]

    # Flatten batches into rows and stack x-rows above y-rows so the fused
    # projection is a single matmul inside the kernel.
    xy = jnp.concatenate([x.reshape(bsz * lx, d), y.reshape(bsz * ly, d)], axis=0)

    kernel = functools.partial(_cross_attn_kernel, bsz=bsz, lx=lx, ly=ly, d=d)
    vmem_full = lambda: pl.BlockSpec(memory_space=pltpu.MemorySpace.VMEM)

    out2d = pl.pallas_call(
        kernel,
        out_shape=jax.ShapeDtypeStruct((rows, dp), jnp.float32),
        in_specs=[vmem_full() for _ in range(5)],
        out_specs=vmem_full(),
    )(xy, wqkv, bqkv, wm_pad, bm_pad)

    # Drop lane padding and restore [B, Lx+Ly, D].
    return out2d[:, :d].reshape(bsz, lx + ly, d)


def _reference(x, y, w_stack, b_stack, wm, bm):
    """Pure-JAX reference mirroring the PyTorch forward (unfused weights).

    All matmuls run at Precision.HIGHEST so the reference is true f32 — the
    previous tolerance failure came from the reference's default (bf16-pass)
    matmul precision plus the approximate softmax reciprocal in the kernel.
    """
    def lin(inp, i):
        return jnp.einsum("bld,de->ble", inp, w_stack[i], precision=HIGHEST) + b_stack[i]

    qx, kx, vx = lin(x, 0), lin(x, 1), lin(x, 2)
    qy, ky, vy = lin(y, 3), lin(y, 4), lin(y, 5)
    d = x.shape[-1]
    scale = d ** (-0.5)

    def attn(q, k, v):
        s = jnp.einsum("bld,bmd->blm", q, k, precision=HIGHEST) * scale
        p = jax.nn.softmax(s, axis=-1)
        return jnp.einsum("blm,bmd->bld", p, v, precision=HIGHEST)

    o1 = attn(qx, kx, vx)
    o2 = attn(qx, ky, vy)
    o3 = attn(qy, kx, vx)
    o4 = attn(ky, qy, vy)   # query/key swapped exactly as in the module

    def ln(z):
        mu = jnp.mean(z, axis=-1, keepdims=True)
        var = jnp.mean((z - mu) ** 2, axis=-1, keepdims=True)
        return (z - mu) * jax.lax.rsqrt(var + LN_EPS)

    cat = jnp.concatenate([ln(o1 + o2), ln(o3 + o4)], axis=1)
    m = jnp.einsum("bld,de->ble", cat, wm, precision=HIGHEST) + bm
    return jnp.where(m > 0, m, jnp.exp(m) - 1.0)


if __name__ == "__main__":
    B, L, D = 2, 8, 32   # small shapes: batch=2, seq=8, hidden=32

    key = jax.random.PRNGKey(0)
    kx_, ky_, kw, kb, kwm, kbm = jax.random.split(key, 6)

    x = jax.random.normal(kx_, (B, L, D), dtype=jnp.float32)
    y = jax.random.normal(ky_, (B, L, D), dtype=jnp.float32)

    # Deterministic synthetic parameters ("transposed" convention: inp @ W + b).
    init_scale = 1.0 / (D ** 0.5)
    w_stack = jax.random.uniform(kw, (6, D, D), jnp.float32, -init_scale, init_scale)
    b_stack = jax.random.uniform(kb, (6, D), jnp.float32, -init_scale, init_scale)
    wm = jax.random.uniform(kwm, (D, D), jnp.float32, -init_scale, init_scale)
    bm = jax.random.uniform(kbm, (1, D), jnp.float32, -init_scale, init_scale)

    # One-time weight prep: fuse all q/k/v, fold the attention scale, pad merge.
    wqkv, bqkv, wm_pad, bm_pad = prepare_params(w_stack, b_stack, wm, bm, D)

    out = cross_attention_layer(x, y, wqkv, bqkv, wm_pad, bm_pad)
    out = jax.block_until_ready(out)

    ref = _reference(x, y, w_stack, b_stack, wm, bm)
    assert out.shape == (B, 2 * L, D), out.shape
    max_err = float(jnp.max(jnp.abs(out - ref)))
    # Exact-divide softmax + HIGHEST-precision matmuls on both sides: parity is
    # ~1e-5; real wiring bugs give errors > 0.05.
    assert jnp.allclose(out, ref, atol=1e-3, rtol=1e-3), max_err

    print("KERNEL_OK")
</pallas_src>

<mosaic_0001>
module attributes {stable_mosaic.version = 11 : i64} {
  func.func @_cross_attn_kernel(%arg0: memref<32x32xf32, #tpu.memory_space<vmem>>, %arg1: memref<32x192xf32, #tpu.memory_space<vmem>>, %arg2: memref<1x192xf32, #tpu.memory_space<vmem>>, %arg3: memref<32x128xf32, #tpu.memory_space<vmem>>, %arg4: memref<1x128xf32, #tpu.memory_space<vmem>>, %arg5: memref<32x128xf32, #tpu.memory_space<vmem>>) attributes {dimension_semantics = [], scalar_prefetch = 0 : i64, scratch_operands = 0 : i64, tpu.core_type = #tpu.core_type<tc>} {
    %c0 = arith.constant 0 : index
    %c0_0 = arith.constant 0 : index
    %0 = vector.load %arg0[%c0, %c0_0] : memref<32x32xf32, #tpu.memory_space<vmem>>, vector<32x32xf32>
    %c0_1 = arith.constant 0 : index
    %c0_2 = arith.constant 0 : index
    %1 = vector.load %arg1[%c0_1, %c0_2] : memref<32x192xf32, #tpu.memory_space<vmem>>, vector<32x192xf32>
    %cst = arith.constant dense<0.000000e+00> : vector<32x192xf32>
    %2 = tpu.matmul %0, %1, %cst {dimension_numbers = #tpu.dot_dimension_numbers<[1], [0], [0], [1], [0, 0, 1, 1], [], []>, precision = #tpu.contract_precision<fp32>} : vector<32x32xf32>, vector<32x192xf32>, vector<32x192xf32> -> vector<32x192xf32>
    %c0_3 = arith.constant 0 : index
    %c0_4 = arith.constant 0 : index
    %3 = vector.load %arg2[%c0_3, %c0_4] : memref<1x192xf32, #tpu.memory_space<vmem>>, vector<1x192xf32>
    %4 = vector.broadcast %3 : vector<1x192xf32> to vector<32x192xf32>
    %5 = arith.addf %2, %4 : vector<32x192xf32>
    %6 = tpu.iota {dimensions = array<i32: 1>} : vector<8x16xi32>
    %c8_i32 = arith.constant 8 : i32
    %7 = vector.broadcast %c8_i32 : i32 to vector<8x16xi32>
    %8 = arith.cmpi slt, %6, %7 : vector<8x16xi32>
    %9 = vector.extract_strided_slice %5 {offsets = [0, 0], sizes = [8, 32], strides = [1, 1]} : vector<32x192xf32> to vector<8x32xf32>
    %10 = vector.extract_strided_slice %5 {offsets = [0, 32], sizes = [8, 32], strides = [1, 1]} : vector<32x192xf32> to vector<8x32xf32>
    %11 = vector.extract_strided_slice %5 {offsets = [0, 64], sizes = [8, 32], strides = [1, 1]} : vector<32x192xf32> to vector<8x32xf32>
    %12 = vector.extract_strided_slice %5 {offsets = [16, 96], sizes = [8, 32], strides = [1, 1]} : vector<32x192xf32> to vector<8x32xf32>
    %13 = vector.extract_strided_slice %5 {offsets = [16, 128], sizes = [8, 32], strides = [1, 1]} : vector<32x192xf32> to vector<8x32xf32>
    %14 = vector.extract_strided_slice %5 {offsets = [16, 160], sizes = [8, 32], strides = [1, 1]} : vector<32x192xf32> to vector<8x32xf32>
    %15 = tpu.concatenate %10, %13 in 0 : vector<8x32xf32>, vector<8x32xf32> -> vector<16x32xf32>
    %16 = tpu.concatenate %11, %14 in 0 : vector<8x32xf32>, vector<8x32xf32> -> vector<16x32xf32>
    %cst_5 = arith.constant dense<0.000000e+00> : vector<8x16xf32>
    %17 = tpu.matmul %9, %15, %cst_5 {dimension_numbers = #tpu.dot_dimension_numbers<[1], [1], [0], [0], [0, 0, 1, 0], [], []>, precision = #tpu.contract_precision<fp32>} : vector<8x32xf32>, vector<16x32xf32>, vector<8x16xf32> -> vector<8x16xf32>
    %cst_6 = arith.constant 0xFF800000 : f32
    %18 = vector.broadcast %cst_6 : f32 to vector<8x16xf32>
    %19 = arith.select %8, %17, %18 : vector<8x16xi1>, vector<8x16xf32>
    %cst_7 = arith.constant dense<0xFF800000> : vector<8xf32>
    %20 = vector.multi_reduction <maximumf>, %19, %cst_7 [1] : vector<8x16xf32> to vector<8xf32>
    %21 = vector.shape_cast %20 : vector<8xf32> to vector<8x1xf32>
    %cst_8 = arith.constant 0xFF800000 : f32
    %22 = vector.broadcast %cst_8 : f32 to vector<8x16xf32>
    %23 = arith.select %8, %22, %17 : vector<8x16xi1>, vector<8x16xf32>
    %cst_9 = arith.constant dense<0xFF800000> : vector<8xf32>
    %24 = vector.multi_reduction <maximumf>, %23, %cst_9 [1] : vector<8x16xf32> to vector<8xf32>
    %25 = vector.shape_cast %24 : vector<8xf32> to vector<8x1xf32>
    %26 = vector.shape_cast %21 : vector<8x1xf32> to vector<8x1xf32>
    %27 = vector.broadcast %26 : vector<8x1xf32> to vector<8x16xf32>
    %28 = vector.shape_cast %25 : vector<8x1xf32> to vector<8x1xf32>
    %29 = vector.broadcast %28 : vector<8x1xf32> to vector<8x16xf32>
    %30 = arith.select %8, %27, %29 : vector<8x16xi1>, vector<8x16xf32>
    %31 = arith.subf %17, %30 : vector<8x16xf32>
    %32 = math.exp %31 : vector<8x16xf32>
    %cst_10 = arith.constant 0.000000e+00 : f32
    %33 = vector.broadcast %cst_10 : f32 to vector<8x16xf32>
    %34 = arith.select %8, %32, %33 : vector<8x16xi1>, vector<8x16xf32>
    %cst_11 = arith.constant dense<0.000000e+00> : vector<8xf32>
    %35 = vector.multi_reduction <add>, %34, %cst_11 [1] : vector<8x16xf32> to vector<8xf32>
    %36 = vector.shape_cast %35 : vector<8xf32> to vector<8x1xf32>
    %cst_12 = arith.constant 0.000000e+00 : f32
    %37 = vector.broadcast %cst_12 : f32 to vector<8x16xf32>
    %38 = arith.select %8, %37, %32 : vector<8x16xi1>, vector<8x16xf32>
    %cst_13 = arith.constant dense<0.000000e+00> : vector<8xf32>
    %39 = vector.multi_reduction <add>, %38, %cst_13 [1] : vector<8x16xf32> to vector<8xf32>
    %40 = vector.shape_cast %39 : vector<8xf32> to vector<8x1xf32>
    %41 = vector.shape_cast %36 : vector<8x1xf32> to vector<8x1xf32>
    %42 = vector.broadcast %41 : vector<8x1xf32> to vector<8x16xf32>
    %43 = vector.shape_cast %40 : vector<8x1xf32> to vector<8x1xf32>
    %44 = vector.broadcast %43 : vector<8x1xf32> to vector<8x16xf32>
    %45 = arith.select %8, %42, %44 : vector<8x16xi1>, vector<8x16xf32>
    %46 = arith.divf %32, %45 : vector<8x16xf32>
    %cst_14 = arith.constant dense<0.000000e+00> : vector<8x32xf32>
    %47 = tpu.matmul %46, %16, %cst_14 {dimension_numbers = #tpu.dot_dimension_numbers<[1], [0], [0], [1], [0, 0, 1, 1], [], []>, precision = #tpu.contract_precision<fp32>} : vector<8x16xf32>, vector<16x32xf32>, vector<8x32xf32> -> vector<8x32xf32>
    %cst_15 = arith.constant dense<0.000000e+00> : vector<8x8xf32>
    %48 = tpu.matmul %12, %10, %cst_15 {dimension_numbers = #tpu.dot_dimension_numbers<[1], [1], [0], [0], [0, 0, 1, 0], [], []>, precision = #tpu.contract_precision<fp32>} : vector<8x32xf32>, vector<8x32xf32>, vector<8x8xf32> -> vector<8x8xf32>
    %cst_16 = arith.constant dense<0xFF800000> : vector<8xf32>
    %49 = vector.multi_reduction <maximumf>, %48, %cst_16 [1] : vector<8x8xf32> to vector<8xf32>
    %50 = vector.shape_cast %49 : vector<8xf32> to vector<8x1xf32>
    %51 = vector.broadcast %50 : vector<8x1xf32> to vector<8x8xf32>
    %52 = arith.subf %48, %51 : vector<8x8xf32>
    %53 = math.exp %52 : vector<8x8xf32>
    %cst_17 = arith.constant dense<0.000000e+00> : vector<8xf32>
    %54 = vector.multi_reduction <add>, %53, %cst_17 [1] : vector<8x8xf32> to vector<8xf32>
    %55 = vector.shape_cast %54 : vector<8xf32> to vector<8x1xf32>
    %56 = vector.broadcast %55 : vector<8x1xf32> to vector<8x8xf32>
    %57 = arith.divf %53, %56 : vector<8x8xf32>
    %cst_18 = arith.constant dense<0.000000e+00> : vector<8x8xf32>
    %58 = tpu.matmul %13, %12, %cst_18 {dimension_numbers = #tpu.dot_dimension_numbers<[1], [1], [0], [0], [0, 0, 1, 0], [], []>, precision = #tpu.contract_precision<fp32>} : vector<8x32xf32>, vector<8x32xf32>, vector<8x8xf32> -> vector<8x8xf32>
    %cst_19 = arith.constant dense<0xFF800000> : vector<8xf32>
    %59 = vector.multi_reduction <maximumf>, %58, %cst_19 [1] : vector<8x8xf32> to vector<8xf32>
    %60 = vector.shape_cast %59 : vector<8xf32> to vector<8x1xf32>
    %61 = vector.broadcast %60 : vector<8x1xf32> to vector<8x8xf32>
    %62 = arith.subf %58, %61 : vector<8x8xf32>
    %63 = math.exp %62 : vector<8x8xf32>
    %cst_20 = arith.constant dense<0.000000e+00> : vector<8xf32>
    %64 = vector.multi_reduction <add>, %63, %cst_20 [1] : vector<8x8xf32> to vector<8xf32>
    %65 = vector.shape_cast %64 : vector<8xf32> to vector<8x1xf32>
    %66 = vector.broadcast %65 : vector<8x1xf32> to vector<8x8xf32>
    %67 = arith.divf %63, %66 : vector<8x8xf32>
    %cst_21 = arith.constant dense<0.000000e+00> : vector<8x32xf32>
    %68 = tpu.matmul %57, %11, %cst_21 {dimension_numbers = #tpu.dot_dimension_numbers<[1], [0], [0], [1], [0, 0, 1, 1], [], []>, precision = #tpu.contract_precision<fp32>} : vector<8x8xf32>, vector<8x32xf32>, vector<8x32xf32> -> vector<8x32xf32>
    %cst_22 = arith.constant dense<0.000000e+00> : vector<8x32xf32>
    %69 = tpu.matmul %67, %14, %cst_22 {dimension_numbers = #tpu.dot_dimension_numbers<[1], [0], [0], [1], [0, 0, 1, 1], [], []>, precision = #tpu.contract_precision<fp32>} : vector<8x8xf32>, vector<8x32xf32>, vector<8x32xf32> -> vector<8x32xf32>
    %70 = arith.addf %68, %69 : vector<8x32xf32>
    %cst_23 = arith.constant dense<0.000000e+00> : vector<8xf32>
    %71 = vector.multi_reduction <add>, %47, %cst_23 [1] : vector<8x32xf32> to vector<8xf32>
    %72 = vector.shape_cast %71 : vector<8xf32> to vector<8x1xf32>
    %cst_24 = arith.constant 3.200000e+01 : f32
    %73 = vector.broadcast %cst_24 : f32 to vector<8x1xf32>
    %74 = arith.divf %72, %73 : vector<8x1xf32>
    %75 = vector.broadcast %74 : vector<8x1xf32> to vector<8x32xf32>
    %76 = arith.subf %47, %75 : vector<8x32xf32>
    %77 = vector.broadcast %74 : vector<8x1xf32> to vector<8x32xf32>
    %78 = arith.subf %47, %77 : vector<8x32xf32>
    %79 = arith.mulf %76, %78 : vector<8x32xf32>
    %cst_25 = arith.constant dense<0.000000e+00> : vector<8xf32>
    %80 = vector.multi_reduction <add>, %79, %cst_25 [1] : vector<8x32xf32> to vector<8xf32>
    %81 = vector.shape_cast %80 : vector<8xf32> to vector<8x1xf32>
    %cst_26 = arith.constant 3.200000e+01 : f32
    %82 = vector.broadcast %cst_26 : f32 to vector<8x1xf32>
    %83 = arith.divf %81, %82 : vector<8x1xf32>
    %84 = vector.broadcast %74 : vector<8x1xf32> to vector<8x32xf32>
    %85 = arith.subf %47, %84 : vector<8x32xf32>
    %cst_27 = arith.constant 9.99999974E-6 : f32
    %86 = vector.broadcast %cst_27 : f32 to vector<8x1xf32>
    %87 = arith.addf %83, %86 : vector<8x1xf32>
    %88 = math.rsqrt %87 : vector<8x1xf32>
    %89 = vector.broadcast %88 : vector<8x1xf32> to vector<8x32xf32>
    %90 = arith.mulf %85, %89 : vector<8x32xf32>
    %cst_28 = arith.constant dense<0.000000e+00> : vector<8xf32>
    %91 = vector.multi_reduction <add>, %70, %cst_28 [1] : vector<8x32xf32> to vector<8xf32>
    %92 = vector.shape_cast %91 : vector<8xf32> to vector<8x1xf32>
    %cst_29 = arith.constant 3.200000e+01 : f32
    %93 = vector.broadcast %cst_29 : f32 to vector<8x1xf32>
    %94 = arith.divf %92, %93 : vector<8x1xf32>
    %95 = vector.broadcast %94 : vector<8x1xf32> to vector<8x32xf32>
    %96 = arith.subf %70, %95 : vector<8x32xf32>
    %97 = vector.broadcast %94 : vector<8x1xf32> to vector<8x32xf32>
    %98 = arith.subf %70, %97 : vector<8x32xf32>
    %99 = arith.mulf %96, %98 : vector<8x32xf32>
    %cst_30 = arith.constant dense<0.000000e+00> : vector<8xf32>
    %100 = vector.multi_reduction <add>, %99, %cst_30 [1] : vector<8x32xf32> to vector<8xf32>
    %101 = vector.shape_cast %100 : vector<8xf32> to vector<8x1xf32>
    %cst_31 = arith.constant 3.200000e+01 : f32
    %102 = vector.broadcast %cst_31 : f32 to vector<8x1xf32>
    %103 = arith.divf %101, %102 : vector<8x1xf32>
    %104 = vector.broadcast %94 : vector<8x1xf32> to vector<8x32xf32>
    %105 = arith.subf %70, %104 : vector<8x32xf32>
    %cst_32 = arith.constant 9.99999974E-6 : f32
    %106 = vector.broadcast %cst_32 : f32 to vector<8x1xf32>
    %107 = arith.addf %103, %106 : vector<8x1xf32>
    %108 = math.rsqrt %107 : vector<8x1xf32>
    %109 = vector.broadcast %108 : vector<8x1xf32> to vector<8x32xf32>
    %110 = arith.mulf %105, %109 : vector<8x32xf32>
    %111 = vector.extract_strided_slice %5 {offsets = [8, 0], sizes = [8, 32], strides = [1, 1]} : vector<32x192xf32> to vector<8x32xf32>
    %112 = vector.extract_strided_slice %5 {offsets = [8, 32], sizes = [8, 32], strides = [1, 1]} : vector<32x192xf32> to vector<8x32xf32>
    %113 = vector.extract_strided_slice %5 {offsets = [8, 64], sizes = [8, 32], strides = [1, 1]} : vector<32x192xf32> to vector<8x32xf32>
    %114 = vector.extract_strided_slice %5 {offsets = [24, 96], sizes = [8, 32], strides = [1, 1]} : vector<32x192xf32> to vector<8x32xf32>
    %115 = vector.extract_strided_slice %5 {offsets = [24, 128], sizes = [8, 32], strides = [1, 1]} : vector<32x192xf32> to vector<8x32xf32>
    %116 = vector.extract_strided_slice %5 {offsets = [24, 160], sizes = [8, 32], strides = [1, 1]} : vector<32x192xf32> to vector<8x32xf32>
    %117 = tpu.concatenate %112, %115 in 0 : vector<8x32xf32>, vector<8x32xf32> -> vector<16x32xf32>
    %118 = tpu.concatenate %113, %116 in 0 : vector<8x32xf32>, vector<8x32xf32> -> vector<16x32xf32>
    %cst_33 = arith.constant dense<0.000000e+00> : vector<8x16xf32>
    %119 = tpu.matmul %111, %117, %cst_33 {dimension_numbers = #tpu.dot_dimension_numbers<[1], [1], [0], [0], [0, 0, 1, 0], [], []>, precision = #tpu.contract_precision<fp32>} : vector<8x32xf32>, vector<16x32xf32>, vector<8x16xf32> -> vector<8x16xf32>
    %cst_34 = arith.constant 0xFF800000 : f32
    %120 = vector.broadcast %cst_34 : f32 to vector<8x16xf32>
    %121 = arith.select %8, %119, %120 : vector<8x16xi1>, vector<8x16xf32>
    %cst_35 = arith.constant dense<0xFF800000> : vector<8xf32>
    %122 = vector.multi_reduction <maximumf>, %121, %cst_35 [1] : vector<8x16xf32> to vector<8xf32>
    %123 = vector.shape_cast %122 : vector<8xf32> to vector<8x1xf32>
    %cst_36 = arith.constant 0xFF800000 : f32
    %124 = vector.broadcast %cst_36 : f32 to vector<8x16xf32>
    %125 = arith.select %8, %124, %119 : vector<8x16xi1>, vector<8x16xf32>
    %cst_37 = arith.constant dense<0xFF800000> : vector<8xf32>
    %126 = vector.multi_reduction <maximumf>, %125, %cst_37 [1] : vector<8x16xf32> to vector<8xf32>
    %127 = vector.shape_cast %126 : vector<8xf32> to vector<8x1xf32>
    %128 = vector.shape_cast %123 : vector<8x1xf32> to vector<8x1xf32>
    %129 = vector.broadcast %128 : vector<8x1xf32> to vector<8x16xf32>
    %130 = vector.shape_cast %127 : vector<8x1xf32> to vector<8x1xf32>
    %131 = vector.broadcast %130 : vector<8x1xf32> to vector<8x16xf32>
    %132 = arith.select %8, %129, %131 : vector<8x16xi1>, vector<8x16xf32>
    %133 = arith.subf %119, %132 : vector<8x16xf32>
    %134 = math.exp %133 : vector<8x16xf32>
    %cst_38 = arith.constant 0.000000e+00 : f32
    %135 = vector.broadcast %cst_38 : f32 to vector<8x16xf32>
    %136 = arith.select %8, %134, %135 : vector<8x16xi1>, vector<8x16xf32>
    %cst_39 = arith.constant dense<0.000000e+00> : vector<8xf32>
    %137 = vector.multi_reduction <add>, %136, %cst_39 [1] : vector<8x16xf32> to vector<8xf32>
    %138 = vector.shape_cast %137 : vector<8xf32> to vector<8x1xf32>
    %cst_40 = arith.constant 0.000000e+00 : f32
    %139 = vector.broadcast %cst_40 : f32 to vector<8x16xf32>
    %140 = arith.select %8, %139, %134 : vector<8x16xi1>, vector<8x16xf32>
    %cst_41 = arith.constant dense<0.000000e+00> : vector<8xf32>
    %141 = vector.multi_reduction <add>, %140, %cst_41 [1] : vector<8x16xf32> to vector<8xf32>
    %142 = vector.shape_cast %141 : vector<8xf32> to vector<8x1xf32>
    %143 = vector.shape_cast %138 : vector<8x1xf32> to vector<8x1xf32>
    %144 = vector.broadcast %143 : vector<8x1xf32> to vector<8x16xf32>
    %145 = vector.shape_cast %142 : vector<8x1xf32> to vector<8x1xf32>
    %146 = vector.broadcast %145 : vector<8x1xf32> to vector<8x16xf32>
    %147 = arith.select %8, %144, %146 : vector<8x16xi1>, vector<8x16xf32>
    %148 = arith.divf %134, %147 : vector<8x16xf32>
    %cst_42 = arith.constant dense<0.000000e+00> : vector<8x32xf32>
    %149 = tpu.matmul %148, %118, %cst_42 {dimension_numbers = #tpu.dot_dimension_numbers<[1], [0], [0], [1], [0, 0, 1, 1], [], []>, precision = #tpu.contract_precision<fp32>} : vector<8x16xf32>, vector<16x32xf32>, vector<8x32xf32> -> vector<8x32xf32>
    %cst_43 = arith.constant dense<0.000000e+00> : vector<8x8xf32>
    %150 = tpu.matmul %114, %112, %cst_43 {dimension_numbers = #tpu.dot_dimension_numbers<[1], [1], [0], [0], [0, 0, 1, 0], [], []>, precision = #tpu.contract_precision<fp32>} : vector<8x32xf32>, vector<8x32xf32>, vector<8x8xf32> -> vector<8x8xf32>
    %cst_44 = arith.constant dense<0xFF800000> : vector<8xf32>
    %151 = vector.multi_reduction <maximumf>, %150, %cst_44 [1] : vector<8x8xf32> to vector<8xf32>
    %152 = vector.shape_cast %151 : vector<8xf32> to vector<8x1xf32>
    %153 = vector.broadcast %152 : vector<8x1xf32> to vector<8x8xf32>
    %154 = arith.subf %150, %153 : vector<8x8xf32>
    %155 = math.exp %154 : vector<8x8xf32>
    %cst_45 = arith.constant dense<0.000000e+00> : vector<8xf32>
    %156 = vector.multi_reduction <add>, %155, %cst_45 [1] : vector<8x8xf32> to vector<8xf32>
    %157 = vector.shape_cast %156 : vector<8xf32> to vector<8x1xf32>
    %158 = vector.broadcast %157 : vector<8x1xf32> to vector<8x8xf32>
    %159 = arith.divf %155, %158 : vector<8x8xf32>
    %cst_46 = arith.constant dense<0.000000e+00> : vector<8x8xf32>
    %160 = tpu.matmul %115, %114, %cst_46 {dimension_numbers = #tpu.dot_dimension_numbers<[1], [1], [0], [0], [0, 0, 1, 0], [], []>, precision = #tpu.contract_precision<fp32>} : vector<8x32xf32>, vector<8x32xf32>, vector<8x8xf32> -> vector<8x8xf32>
    %cst_47 = arith.constant dense<0xFF800000> : vector<8xf32>
    %161 = vector.multi_reduction <maximumf>, %160, %cst_47 [1] : vector<8x8xf32> to vector<8xf32>
    %162 = vector.shape_cast %161 : vector<8xf32> to vector<8x1xf32>
    %163 = vector.broadcast %162 : vector<8x1xf32> to vector<8x8xf32>
    %164 = arith.subf %160, %163 : vector<8x8xf32>
    %165 = math.exp %164 : vector<8x8xf32>
    %cst_48 = arith.constant dense<0.000000e+00> : vector<8xf32>
    %166 = vector.multi_reduction <add>, %165, %cst_48 [1] : vector<8x8xf32> to vector<8xf32>
    %167 = vector.shape_cast %166 : vector<8xf32> to vector<8x1xf32>
    %168 = vector.broadcast %167 : vector<8x1xf32> to vector<8x8xf32>
    %169 = arith.divf %165, %168 : vector<8x8xf32>
    %cst_49 = arith.constant dense<0.000000e+00> : vector<8x32xf32>
    %170 = tpu.matmul %159, %113, %cst_49 {dimension_numbers = #tpu.dot_dimension_numbers<[1], [0], [0], [1], [0, 0, 1, 1], [], []>, precision = #tpu.contract_precision<fp32>} : vector<8x8xf32>, vector<8x32xf32>, vector<8x32xf32> -> vector<8x32xf32>
    %cst_50 = arith.constant dense<0.000000e+00> : vector<8x32xf32>
    %171 = tpu.matmul %169, %116, %cst_50 {dimension_numbers = #tpu.dot_dimension_numbers<[1], [0], [0], [1], [0, 0, 1, 1], [], []>, precision = #tpu.contract_precision<fp32>} : vector<8x8xf32>, vector<8x32xf32>, vector<8x32xf32> -> vector<8x32xf32>
    %172 = arith.addf %170, %171 : vector<8x32xf32>
    %cst_51 = arith.constant dense<0.000000e+00> : vector<8xf32>
    %173 = vector.multi_reduction <add>, %149, %cst_51 [1] : vector<8x32xf32> to vector<8xf32>
    %174 = vector.shape_cast %173 : vector<8xf32> to vector<8x1xf32>
    %cst_52 = arith.constant 3.200000e+01 : f32
    %175 = vector.broadcast %cst_52 : f32 to vector<8x1xf32>
    %176 = arith.divf %174, %175 : vector<8x1xf32>
    %177 = vector.broadcast %176 : vector<8x1xf32> to vector<8x32xf32>
    %178 = arith.subf %149, %177 : vector<8x32xf32>
    %179 = vector.broadcast %176 : vector<8x1xf32> to vector<8x32xf32>
    %180 = arith.subf %149, %179 : vector<8x32xf32>
    %181 = arith.mulf %178, %180 : vector<8x32xf32>
    %cst_53 = arith.constant dense<0.000000e+00> : vector<8xf32>
    %182 = vector.multi_reduction <add>, %181, %cst_53 [1] : vector<8x32xf32> to vector<8xf32>
    %183 = vector.shape_cast %182 : vector<8xf32> to vector<8x1xf32>
    %cst_54 = arith.constant 3.200000e+01 : f32
    %184 = vector.broadcast %cst_54 : f32 to vector<8x1xf32>
    %185 = arith.divf %183, %184 : vector<8x1xf32>
    %186 = vector.broadcast %176 : vector<8x1xf32> to vector<8x32xf32>
    %187 = arith.subf %149, %186 : vector<8x32xf32>
    %cst_55 = arith.constant 9.99999974E-6 : f32
    %188 = vector.broadcast %cst_55 : f32 to vector<8x1xf32>
    %189 = arith.addf %185, %188 : vector<8x1xf32>
    %190 = math.rsqrt %189 : vector<8x1xf32>
    %191 = vector.broadcast %190 : vector<8x1xf32> to vector<8x32xf32>
    %192 = arith.mulf %187, %191 : vector<8x32xf32>
    %cst_56 = arith.constant dense<0.000000e+00> : vector<8xf32>
    %193 = vector.multi_reduction <add>, %172, %cst_56 [1] : vector<8x32xf32> to vector<8xf32>
    %194 = vector.shape_cast %193 : vector<8xf32> to vector<8x1xf32>
    %cst_57 = arith.constant 3.200000e+01 : f32
    %195 = vector.broadcast %cst_57 : f32 to vector<8x1xf32>
    %196 = arith.divf %194, %195 : vector<8x1xf32>
    %197 = vector.broadcast %196 : vector<8x1xf32> to vector<8x32xf32>
    %198 = arith.subf %172, %197 : vector<8x32xf32>
    %199 = vector.broadcast %196 : vector<8x1xf32> to vector<8x32xf32>
    %200 = arith.subf %172, %199 : vector<8x32xf32>
    %201 = arith.mulf %198, %200 : vector<8x32xf32>
    %cst_58 = arith.constant dense<0.000000e+00> : vector<8xf32>
    %202 = vector.multi_reduction <add>, %201, %cst_58 [1] : vector<8x32xf32> to vector<8xf32>
    %203 = vector.shape_cast %202 : vector<8xf32> to vector<8x1xf32>
    %cst_59 = arith.constant 3.200000e+01 : f32
    %204 = vector.broadcast %cst_59 : f32 to vector<8x1xf32>
    %205 = arith.divf %203, %204 : vector<8x1xf32>
    %206 = vector.broadcast %196 : vector<8x1xf32> to vector<8x32xf32>
    %207 = arith.subf %172, %206 : vector<8x32xf32>
    %cst_60 = arith.constant 9.99999974E-6 : f32
    %208 = vector.broadcast %cst_60 : f32 to vector<8x1xf32>
    %209 = arith.addf %205, %208 : vector<8x1xf32>
    %210 = math.rsqrt %209 : vector<8x1xf32>
    %211 = vector.broadcast %210 : vector<8x1xf32> to vector<8x32xf32>
    %212 = arith.mulf %207, %211 : vector<8x32xf32>
    %213 = tpu.concatenate %90, %110, %192, %212 in 0 : vector<8x32xf32>, vector<8x32xf32>, vector<8x32xf32>, vector<8x32xf32> -> vector<32x32xf32>
    %c0_61 = arith.constant 0 : index
    %c0_62 = arith.constant 0 : index
    %214 = vector.load %arg3[%c0_61, %c0_62] : memref<32x128xf32, #tpu.memory_space<vmem>>, vector<32x128xf32>
    %cst_63 = arith.constant dense<0.000000e+00> : vector<32x128xf32>
    %215 = tpu.matmul %213, %214, %cst_63 {dimension_numbers = #tpu.dot_dimension_numbers<[1], [0], [0], [1], [0, 0, 1, 1], [], []>, precision = #tpu.contract_precision<fp32>} : vector<32x32xf32>, vector<32x128xf32>, vector<32x128xf32> -> vector<32x128xf32>
    %c0_64 = arith.constant 0 : index
    %c0_65 = arith.constant 0 : index
    %216 = vector.load %arg4[%c0_64, %c0_65] : memref<1x128xf32, #tpu.memory_space<vmem>>, vector<1x128xf32>
    %217 = vector.broadcast %216 : vector<1x128xf32> to vector<32x128xf32>
    %218 = arith.addf %215, %217 : vector<32x128xf32>
    %cst_66 = arith.constant 0.000000e+00 : f32
    %219 = vector.broadcast %cst_66 : f32 to vector<32x128xf32>
    %220 = arith.cmpf ogt, %218, %219 : vector<32x128xf32>
    %cst_67 = arith.constant 0.000000e+00 : f32
    %221 = vector.broadcast %cst_67 : f32 to vector<32x128xf32>
    %222 = arith.minimumf %218, %221 : vector<32x128xf32>
    %223 = math.exp %222 : vector<32x128xf32>
    %cst_68 = arith.constant 1.000000e+00 : f32
    %224 = vector.broadcast %cst_68 : f32 to vector<32x128xf32>
    %225 = arith.subf %223, %224 : vector<32x128xf32>
    %226 = arith.select %220, %218, %225 : vector<32x128xi1>, vector<32x128xf32>
    %c0_69 = arith.constant 0 : index
    %c0_70 = arith.constant 0 : index
    %227 = vector.load %arg5[%c0_69, %c0_70] : memref<32x128xf32, #tpu.memory_space<vmem>>, vector<32x128xf32>
    tpu.vector_store %arg5[%c0_69, %c0_70], %226 {strides = array<i32>} : memref<32x128xf32, #tpu.memory_space<vmem>>, vector<32x128xf32>,
    return
  }
}

</mosaic_0001>

<bundles_post_ra>
// kernel: tpu_custom_call.1
= control target key start
LH: loop header
LB: loop body
LE: loop exit
PB: predicated region body
PF: predicated region fallthrough
CT: control target
= control target key end

     0   :  { %10 = vsyncpa [#allocation3], 0  ;;  %s9177_s0 = inlined_call_operand.hbm [shape: f32[32,32], index: 0, kind: input, shape index: {}]   ;;  %s9178_s1 = inlined_call_operand.hbm [shape: f32[32,192], index: 1, kind: input, shape index: {}]   ;;  %s9179_s2 = inlined_call_operand.vmem [shape: f32[1,192], index: 2, kind: input, shape index: {}]   ;;  %s9180_s3 = inlined_call_operand.hbm [shape: f32[32,128], index: 3, kind: input, shape index: {}]   ;;  %s9181_s4 = inlined_call_operand.vmem [shape: f32[1,128], index: 4, kind: input, shape index: {}]   ;;  %s9182_s5 = inlined_call_operand.hbm [shape: f32[32,128], index: 5, kind: output, shape index: {}]  }
   0x1   :  { %11 = vsyncpa [#allocation6], 0 }
   0x2   :  { %12 = vsyncpa [#allocation4], 0  ;;  %s8312_s18 = smov [#allocation5]   ;;  %s8218_s22 = scalar_lea.hbm %s9178_s1, 1024 }
   0x3   :  { %s30_s19 = sshll.u32 %s8312_s18, 4  ;;  %p8219_p0 = scmp.ne.s32.totalorder %s9178_s1, %s8218_s22  ;;  %s31_s19 = int_to_ptr.vmem [resolvable:$true] %s30_s19 }
   0x4   :  { %p8222_p1 = scmp.lt.u32.totalorder %s8218_s22, %s9178_s1 }
   0x6   :  { %p8224_p2 = pnand %p8222_p1, %p8219_p0 }
   0x8   :  { %8227 = shalt.err (!%p8224_p2)
}
   0x9   :  { %s8228_s27 = scalar_lea.vmem %s31_s19, 1024  ;;  %p8233_p4 = scmp.lt.s32.totalorder %s31_s19, %s31_s19 }
   0xa   :  { %p8229_p3 = scmp.ne.s32.totalorder %s31_s19, %s8228_s27  ;;  %p8234_p5 = scmp.lt.s32.totalorder %s8228_s27, %s8228_s27 }
   0xc   :  { %p8235_p6 = por %p8234_p5, %p8233_p4 }
   0xe   :  { %p8236_p7 = pnand %p8235_p6, %p8229_p3 }
  0x10   :  { %8239 = shalt.err (!%p8236_p7)
}
  0x11   :  { %s8313_s28 = smov 256   ;;  %s8314_s29 = smov 16  }
  0x12   :  { %36 = dma.hbm_to_vmem [thread:$0]  %s9178_s1, 1024, %s31_s19, [#allocation6], %s8313_s28, %s8313_s28, %s8314_s29  }
  0x13   :  { %s8315_s7 = smov [#allocation2]   ;;  %s8240_s11 = scalar_lea.hbm %s9177_s0, 512 }
  0x14   :  { %s18_s8 = sshll.u32 %s8315_s7, 4  ;;  %p8241_p8 = scmp.ne.s32.totalorder %s9177_s0, %s8240_s11  ;;  %s19_s8 = int_to_ptr.vmem [resolvable:$true] %s18_s8 }
  0x15   :  { %p8244_p9 = scmp.lt.u32.totalorder %s8240_s11, %s9177_s0 }
  0x17   :  { %p8246_p10 = pnand %p8244_p9, %p8241_p8 }
  0x19   :  { %8249 = shalt.err (!%p8246_p10)
}
  0x1a   :  { %s8250_s16 = scalar_lea.vmem %s19_s8, 512  ;;  %p8255_p12 = scmp.lt.s32.totalorder %s19_s8, %s19_s8 }
  0x1b   :  { %p8251_p11 = scmp.ne.s32.totalorder %s19_s8, %s8250_s16  ;;  %p8256_p13 = scmp.lt.s32.totalorder %s8250_s16, %s8250_s16 }
  0x1d   :  { %p8257_p0 = por %p8256_p13, %p8255_p12 }
  0x1f   :  { %p8258_p1 = pnand %p8257_p0, %p8251_p11 }
  0x21   :  { %8261 = shalt.err (!%p8258_p1)
}
  0x22   :  { %s8316_s1 = smov 128   ;;  %s8317_s17 = smov 8  }
  0x23   :  { %24 = dma.hbm_to_vmem [thread:$0]  %s9177_s0, 512, %s19_s8, [#allocation3], %s8316_s1, %s8316_s1, %s8317_s17  }
  0x24   :  { %s8318_s20 = smov [#allocation7]   ;;  %s8262_s24 = scalar_lea.hbm %s9180_s3, 512 }
  0x25   :  { %s44_s21 = sshll.u32 %s8318_s20, 4  ;;  %p8263_p2 = scmp.ne.s32.totalorder %s9180_s3, %s8262_s24  ;;  %s45_s21 = int_to_ptr.vmem [resolvable:$true] %s44_s21 }
  0x26   :  { %p8266_p3 = scmp.lt.u32.totalorder %s8262_s24, %s9180_s3 }
  0x28   :  { %p8268_p4 = pnand %p8266_p3, %p8263_p2 }
  0x2a   :  { %8271 = shalt.err (!%p8268_p4)
}
  0x2b   :  { %s8272_s29 = scalar_lea.vmem %s45_s21, 512  ;;  %p8277_p6 = scmp.lt.s32.totalorder %s45_s21, %s45_s21 }
  0x2c   :  { %p8273_p5 = scmp.ne.s32.totalorder %s45_s21, %s8272_s29  ;;  %p8278_p7 = scmp.lt.s32.totalorder %s8272_s29, %s8272_s29 }
  0x2e   :  { %p8279_p8 = por %p8278_p7, %p8277_p6 }
  0x30   :  { %p8280_p9 = pnand %p8279_p8, %p8273_p5 }
  0x32   :  { %8283 = shalt.err (!%p8280_p9)
}
  0x33   :  { %50 = dma.hbm_to_vmem [thread:$0]  %s9180_s3, 512, %s45_s21, [#allocation6], %s8316_s1, %s8316_s1, %s8317_s17  }
  0x34   :  { %8306 = dma.done.wait [#allocation3], 512  }
  0x35   :  { %8307 = vsyncadd [#allocation3], 4294966784 }
  0x36   :  { %8308 = dma.done.wait [#allocation6], 1536  }
  0x37   :  { %8309 = vsyncadd [#allocation6], 4294965760  ;;  %v8319_v0 = vmov 0.0   ;;  %v67_v1 = vld [vmem:[#allocation5 + $0x8] sm:$0xff]  ;;  %v69_v2 = vld [vmem:[#allocation5 + $0x18] sm:$0xff]  ;;  %vm86_vm0 = vcmask 261120  }
  0x38   :  { %171 = vmatprep.mubr.f32.mxu0 %v8319_v0  ;;  %v66_v3 = vld [vmem:[#allocation5] sm:$0xff]  ;;  %v99_v4 = vand.u32 4294901760, %v67_v1  ;;  %v103_v5 = vand.u32 4294901760, %v69_v2  ;;  %v68_v6 = vld [vmem:[#allocation5 + $0x10] sm:$0xff]  ;;  %v71_v8 = vld [vmem:[#allocation5 + $0x28] sm:$0xff]  ;;  %s8320_s7 = smov 32  }
  0x39   :  { %v101_v7 = vand.u32 4294901760, %v66_v3  ;;  %v73_v9 = vld [vmem:[#allocation5 + $0x38] sm:$0xff]  ;;  %v105_v10 = vand.u32 4294901760, %v68_v6  ;;  %v107_v11 = vand.u32 4294901760, %v71_v8  ;;  %v70_v13 = vld [vmem:[#allocation5 + $0x20] sm:$0xff]  ;;  %v72_v14 = vld [vmem:[#allocation5 + $0x30] sm:$0xff] }
  0x3a   :  { %v111_v12 = vand.u32 4294901760, %v73_v9  ;;  %v62_v15 = vld [vmem:[#allocation2] sm:$0xff]  ;;  %v8399_v16 = vpack.c.bf16 %v103_v5, %v99_v4  ;;  %v8401_v17 = vsub.f32 %v67_v1, %v99_v4  ;;  %v8403_v18 = vsub.f32 %v69_v2, %v103_v5  ;;  %v63_v32 = vld [vmem:[#allocation2 + $0x8] sm:$0xff]  ;;  %v64_v33 = vld [vmem:[#allocation2 + $0x10] sm:$0xff]  ;;  %s8324_s8 = smov 64  }
  0x3b   :  { %v8405_v19 = vsub.f32 %v66_v3, %v101_v7  ;;  %v8407_v20 = vpack.c.bf16 %v105_v10, %v101_v7  ;;  %v8409_v21 = vsub.f32 %v68_v6, %v105_v10  ;;  %v8413_v23 = vsub.f32 %v71_v8, %v107_v11  ;;  %v65_v58 = vld [vmem:[#allocation2 + $0x18] sm:$0xff] }
  0x3c   :  { %v8411_v22 = vpack.c.bf16 %v111_v12, %v107_v11  ;;  %7804 = vmatprep.subr.bf16.mxu0 %v8399_v16  ;;  %v8416_v24 = vsub.f32 %v73_v9, %v111_v12  ;;  %v109_v25 = vand.u32 4294901760, %v70_v13  ;;  %v113_v26 = vand.u32 4294901760, %v72_v14 }
  0x3d   :  { %v88_v27 = vsel %vm86_vm0, %v62_v15, 0  ;;  %7806 = vmatpush1.bf16.msra.mxu0 %v8407_v20  ;;  %v216_v29 = vand.u32 4294901760, %v8401_v17  ;;  %v228_v30 = vand.u32 4294901760, %v8403_v18  ;;  %v222_v31 = vand.u32 4294901760, %v8405_v19 }
  0x3e   :  { %v8420_v28 = vand.u32 4294901760, %v88_v27  ;;  %7808 = vmatprep.subr.bf16.mxu0 %v8411_v22  ;;  %v8426_v34 = vpack.c.bf16 %v113_v26, %v109_v25  ;;  %v8428_v35 = vsub.f32 %v70_v13, %v109_v25  ;;  %v8430_v36 = vsub.f32 %v72_v14, %v113_v26 }
  0x3f   :  { %v234_v37 = vand.u32 4294901760, %v8409_v21  ;;  %v217_v39 = vsub.f32 %v8401_v17, %v216_v29  ;;  %v229_v40 = vsub.f32 %v8403_v18, %v228_v30  ;;  %v223_v41 = vsub.f32 %v8405_v19, %v222_v31 }
  0x40   :  { %v8434_v38 = vsub.f32 %v88_v27, %v8420_v28  ;;  %v91_v43 = vsel %vm86_vm0, %v63_v32, 0  ;;  %v94_v44 = vsel %vm86_vm0, %v64_v33, 0  ;;  %v240_v45 = vand.u32 4294901760, %v8413_v23 }
  0x41   :  { %v235_v42 = vsub.f32 %v8409_v21, %v234_v37  ;;  %7810 = vmatpush1.bf16.msra.mxu0 %v8426_v34  ;;  %v218_v47 = vand.u32 4294901760, %v217_v39  ;;  %v230_v48 = vand.u32 4294901760, %v229_v40  ;;  %v224_v49 = vand.u32 4294901760, %v223_v41 }
  0x42   :  { %v174_v46 = vand.u32 4294901760, %v8434_v38  ;;  %v8453_v51 = vand.u32 4294901760, %v91_v43  ;;  %v8455_v52 = vand.u32 4294901760, %v94_v44  ;;  %v241_v53 = vsub.f32 %v8413_v23, %v240_v45 }
  0x43   :  { %v236_v50 = vand.u32 4294901760, %v235_v42  ;;  %v7811_v55 = vpack.c.bf16 %v230_v48, %v218_v47  ;;  %v252_v56 = vand.u32 4294901760, %v8416_v24  ;;  %v246_v57 = vand.u32 4294901760, %v8428_v35 }
  0x44   :  { %v175_v54 = vsub.f32 %v8434_v38, %v174_v46  ;;  %v8466_v60 = vsub.f32 %v91_v43, %v8453_v51  ;;  %v8469_v61 = vsub.f32 %v94_v44, %v8455_v52  ;;  %v242_v62 = vand.u32 4294901760, %v241_v53 }
  0x45   :  { %v7813_v59 = vpack.c.bf16 %v236_v50, %v224_v49  ;;  %7812 = vmatprep.subr.bf16.mxu0 %v7811_v55  ;;  %v253_v1 = vsub.f32 %v8416_v24, %v252_v56  ;;  %v247_v2 = vsub.f32 %v8428_v35, %v246_v57  ;;  %v258_v3 = vand.u32 4294901760, %v8430_v36 }
  0x46   :  { %v176_v63 = vand.u32 4294901760, %v175_v54  ;;  %v184_v4 = vand.u32 4294901760, %v8466_v60  ;;  %v194_v5 = vand.u32 4294901760, %v8469_v61  ;;  %v97_v6 = vsel %vm86_vm0, %v65_v58, 0 }
  0x47   :  { %v254_v7 = vand.u32 4294901760, %v253_v1  ;;  %v248_v8 = vand.u32 4294901760, %v247_v2  ;;  %v259_v9 = vsub.f32 %v8430_v36, %v258_v3  ;;  %v8484_v10 = vand.u32 4294901760, %v97_v6 }
  0x48   :  { %177 = vmatmul.mubr.f32.vlgmr.msra.gmra.mrb[0].mxu0 %v176_v63  ;;  %v185_v11 = vsub.f32 %v8466_v60, %v184_v4  ;;  %v195_v12 = vsub.f32 %v8469_v61, %v194_v5  ;;  %v7819_v26 = vpack.c.bf16 %v8403_v18, %v8401_v17  ;;  %v7821_v41 = vpack.c.bf16 %v8409_v21, %v8405_v19  ;;  %v74_v21 = vld [vmem:[%s9179_s2] sm:$0x3]  ;;  %s8321_s2 = smov 96  }
  0x49   :  { %7814 = vmatpush1.bf16.msra.mxu0 %v7813_v59  ;;  %181 = vmatprep.mubr.f32.mxu0 %v8319_v0  ;;  %v7815_v13 = vpack.c.bf16 %v254_v7, %v242_v62  ;;  %v260_v14 = vand.u32 4294901760, %v259_v9  ;;  %v204_v15 = vsub.f32 %v97_v6, %v8484_v10  ;;  %v7823_v42 = vpack.c.bf16 %v8416_v24, %v8413_v23 }
  0x4a   :  { %v186_v25 = vand.u32 4294901760, %v185_v11  ;;  %v196_v33 = vand.u32 4294901760, %v195_v12  ;;  %v7825_v43 = vpack.c.bf16 %v8430_v36, %v8428_v35  ;;  %v7835_v44 = vpack.c.bf16 %v228_v30, %v216_v29 }
  0x4b   :  { %7816 = vmatprep.subr.bf16.mxu0 %v7815_v13  ;;  %v7817_v27 = vpack.c.bf16 %v260_v14, %v248_v8  ;;  %v205_v32 = vand.u32 4294901760, %v204_v15  ;;  %v7837_v17 = vpack.c.bf16 %v234_v37, %v222_v31  ;;  %v7839_v18 = vpack.c.bf16 %v252_v56, %v240_v45 }
  0x4c   :  { %187 = vmatmul.mubr.f32.gmra.mrb[2].mxu0 %v186_v25  ;;  %v7841_v29 = vpack.c.bf16 %v258_v3, %v246_v57  ;;  %vm8323_vm1 = vmmov 0   ;;  %vm1254_vm3 = vcmask 130048   ;;  %vm2196_vm4 = vcmask 64512  }
  0x4d   :  { %191 = vmatprep.mubr.f32.mxu0 %v8319_v0  ;;  %7818 = vmatpush1.bf16.msra.mxu0 %v7817_v27  ;;  %v206_v39 = vsub.f32 %v204_v15, %v205_v32 }
  0x4e   :  { %7820 = vmatprep.subr.bf16.mxu0 %v7819_v26  ;;  %7315 = vmatprep.mubr.msk.f32.mxu1 %vm8323_vm1, %v8319_v0 }
  0x4f   :  { %v207_v40 = vand.u32 4294901760, %v206_v39 }
  0x50   :  { %197 = vmatmul.mubr.f32.gmra.mrb[4].mxu0 %v196_v33 }
  0x51   :  { %202 = vmatprep.mubr.f32.mxu0 %v8319_v0 }
  0x54   :  { %208 = vmatmul.mubr.f32.gmra.mrb[6].mxu0 %v207_v40 }
  0x55   :  { %318 = vmatprep.mubr.f32.mxu0 %v8319_v0 }
  0x58   :  { %320 = vmatmul.mubr.f32.vlgmr.msra.gmra.mrb[0].mxu0 %v8420_v28 }
  0x59   :  { %7822 = vmatpush1.bf16.msra.mxu0 %v7821_v41  ;;  %324 = vmatprep.mubr.f32.mxu0 %v8319_v0 }
  0x5a   :  { %7824 = vmatprep.subr.bf16.mxu0 %v7823_v42 }
  0x5c   :  { %326 = vmatmul.mubr.f32.gmra.mrb[2].mxu0 %v8453_v51 }
  0x5d   :  { %330 = vmatprep.mubr.f32.mxu0 %v8319_v0  ;;  %7826 = vmatpush1.bf16.msra.mxu0 %v7825_v43 }
  0x5e   :  { %7828 = vmatprep.subr.bf16.mxu0 %v8399_v16 }
  0x60   :  { %332 = vmatmul.mubr.f32.gmra.mrb[4].mxu0 %v8455_v52 }
  0x61   :  { %337 = vmatprep.mubr.f32.mxu0 %v8319_v0 }
  0x64   :  { %339 = vmatmul.mubr.f32.gmra.mrb[6].mxu0 %v8484_v10 }
  0x65   :  { %425 = vmatprep.mubr.f32.mxu0 %v8319_v0 }
  0x68   :  { %428 = vmatmul.mubr.f32.vlgmr.msra.gmra.mrb[0].mxu0 %v8434_v38 }
  0x69   :  { %7830 = vmatpush1.bf16.msra.mxu0 %v8407_v20  ;;  %432 = vmatprep.mubr.f32.mxu0 %v8319_v0 }
  0x6a   :  { %7832 = vmatprep.subr.bf16.mxu0 %v8411_v22 }
  0x6c   :  { %435 = vmatmul.mubr.f32.gmra.mrb[2].mxu0 %v8466_v60 }
  0x6d   :  { %439 = vmatprep.mubr.f32.mxu0 %v8319_v0  ;;  %7834 = vmatpush1.bf16.msra.mxu0 %v8426_v34 }
  0x6e   :  { %7836 = vmatprep.subr.bf16.mxu0 %v7835_v44 }
  0x70   :  { %442 = vmatmul.mubr.f32.gmra.mrb[4].mxu0 %v8469_v61 }
  0x71   :  { %447 = vmatprep.mubr.f32.mxu0 %v8319_v0 }
  0x74   :  { %450 = vmatmul.mubr.f32.gmra.mrb[6].mxu0 %v204_v15 }
  0x75   :  { %528 = vmatprep.mubr.f32.mxu0 %v8319_v0 }
  0x78   :  { %532 = vmatmul.mubr.f32.vlgmr.msra.gmra.mrb[0].mxu0 %v174_v46 }
  0x79   :  { %7838 = vmatpush1.bf16.msra.mxu0 %v7837_v17  ;;  %536 = vmatprep.mubr.f32.mxu0 %v8319_v0 }
  0x7a   :  { %7840 = vmatprep.subr.bf16.mxu0 %v7839_v18 }
  0x7c   :  { %540 = vmatmul.mubr.f32.gmra.mrb[2].mxu0 %v184_v4 }
  0x7d   :  { %544 = vmatprep.mubr.f32.mxu0 %v8319_v0  ;;  %7842 = vmatpush1.bf16.msra.mxu0 %v7841_v29 }
  0x7e   :  { %7844 = vmatprep.subr.bf16.mxu0 %v8399_v16  ;;  %v76_v16 = vlaneseq }
  0x80   :  { %548 = vmatmul.mubr.f32.gmra.mrb[4].mxu0 %v194_v5  ;;  %v77_v19 = vshrl.u32 %v76_v16, 7  ;;  %v8638_v14 = vand.u32 127, %v76_v16 }
  0x81   :  { %553 = vmatprep.mubr.f32.mxu0 %v8319_v0 }
  0x82   :  { %v82_v24 = vsub.s32 1, %v77_v19  ;;  %vm779_vm2 = vcmp.lt.s32.totalorder %v8638_v14, 8 }
  0x84   :  { %557 = vmatmul.mubr.f32.gmra.mrb[6].mxu0 %v205_v32  ;;  %v83_v35 = vrot.slane %v74_v21, %v82_v24 }
  0x85   :  { %651 = vmatprep.mubr.f32.mxu0 %v8319_v0 }
  0x88   :  { %653 = vmatmul.mubr.f32.vlgmr.msra.gmra.mrb[0].mxu0 %v8420_v28 }
  0x89   :  { %7846 = vmatpush1.bf16.msra.mxu0 %v8407_v20  ;;  %657 = vmatprep.mubr.f32.mxu0 %v8319_v0  ;;  %v78_v20 = vsub.s32 0, %v77_v19 }
  0x8a   :  { %7848 = vmatprep.subr.bf16.mxu0 %v8411_v22 }
  0x8c   :  { %659 = vmatmul.mubr.f32.gmra.mrb[2].mxu0 %v8453_v51 }
  0x8d   :  { %663 = vmatprep.mubr.f32.mxu0 %v8319_v0  ;;  %7850 = vmatpush1.bf16.msra.mxu0 %v8426_v34 }
  0x8e   :  { %7460 = vmatprep.subr.mxu0 %v8319_v0 }
  0x90   :  { %665 = vmatmul.mubr.f32.gmra.mrb[4].mxu0 %v8455_v52 }
  0x91   :  { %670 = vmatprep.mubr.f32.mxu0 %v8319_v0 }
  0x94   :  { %672 = vmatmul.mubr.f32.gmra.mrb[6].mxu0 %v8484_v10 }
  0x95   :  { %750 = vmatprep.mubr.f32.mxu0 %v8319_v0 }
  0x98   :  { %752 = vmatmul.mubr.f32.vlgmr.msra.gmra.mrb[0].mxu0 %v8420_v28  ;;  %v79_v28 = vrot.slane %v74_v21, %v78_v20 }
  0x99   :  { %756 = vmatprep.mubr.f32.mxu0 %v8319_v0 }
  0x9c   :  { %758 = vmatmul.mubr.f32.gmra.mrb[2].mxu0 %v8453_v51  ;;  %v8322_v51 = vmov 0.0|0.0  }
  0x9d   :  { %762 = vmatprep.mubr.f32.mxu0 %v8319_v0  ;;  %7851 = vmatprep.subr.bf16.mxu1 %v8322_v51 }
  0xa0   :  { %764 = vmatmul.mubr.f32.gmra.mrb[4].mxu0 %v8455_v52 }
  0xa1   :  { %769 = vmatprep.mubr.f32.mxu0 %v8319_v0 }
  0xa4   :  { %771 = vmatmul.mubr.f32.gmra.mrb[6].mxu0 %v8484_v10 }
  0xa5   :  { %7462 = vmatprep.mubr.msk.f32.mxu0 %vm8323_vm1, %v8319_v0 }
 0x16b   :  { %v753_v22 = vpop.f32.mrb[0].mxu0 }
 0x16c   :  { %v755_v23 = vpop.f32.mrb[1].mxu0  ;;  %v8584_v49 = vadd.f32 %v753_v22, %v79_v28 }
 0x16e   :  { %v788_v55 = vsel %vm86_vm0, %v8584_v49, 0 }
 0x16f   :  { %v759_v30 = vpop.f32.mrb[2].mxu0  ;;  %v861_v57 = vand.u32 4294901760, %v788_v55 }
 0x170   :  { %v8574_v31 = vadd.f32 %v759_v30, %v79_v28  ;;  %v761_v34 = vpop.f32.mrb[3].mxu0 }
 0x171   :  { %v862_v59 = vsub.f32 %v788_v55, %v861_v57 }
 0x173   :  { %v765_v36 = vpop.f32.mrb[4].mxu0  ;;  %v863_v1 = vand.u32 4294901760, %v862_v59 }
 0x174   :  { %v8576_v37 = vadd.f32 %v765_v36, %v79_v28  ;;  %v767_v38 = vpop.f32.mrb[5].mxu0 }
 0x175   :  { %v8578_v45 = vadd.f32 %v767_v38, %v83_v35  ;;  %v864_v6 = vsub.f32 %v862_v59, %v863_v1 }
 0x177   :  { %v772_v46 = vpop.f32.mrb[6].mxu0  ;;  %781 = vrot.lane.b32.xlu0 %v8578_v45, %s8320_s7  ;;  %v865_v10 = vand.u32 4294901760, %v864_v6 }
 0x178   :  { %v8582_v47 = vadd.f32 %v772_v46, %v79_v28  ;;  %v774_v48 = vpop.f32.mrb[7].mxu0 }
 0x179   :  { %v8586_v50 = vadd.f32 %v774_v48, %v83_v35 }
 0x17b   :  { %784 = vrot.lane.b32.xlu0 %v8584_v49, %s8321_s2 }
 0x1e9   :  { %v8595_v52 = vpop.permute.xlu0 %781 }
 0x1ea   :  { %786 = vrot.lane.b32.xlu1 %v8595_v52, %s8321_s2 }
 0x1ed   :  { %v785_v53 = vpop.permute.xlu0 %784 }
 0x1ee   :  { %v790_v54 = vsel %vm86_vm0, %v785_v53, 0 }
 0x1ef   :  { %v8602_v56 = vand.u32 4294901760, %v790_v54 }
 0x1f1   :  { %v8605_v58 = vsub.f32 %v790_v54, %v8602_v56 }
 0x1f3   :  { %v8609_v62 = vand.u32 4294901760, %v8605_v58 }
 0x1f5   :  { %v875_v4 = vsub.f32 %v8605_v58, %v8609_v62 }
 0x1f7   :  { %v8615_v9 = vand.u32 4294901760, %v875_v4 }
 0x25c   :  { %v787_v60 = vpop.permute.xlu1 %786 }
 0x25d   :  { %v792_v61 = vsel %vm86_vm0, %v787_v60, 0 }
 0x25e   :  { %v798_v63 = vand.u32 4294901760, %v792_v61 }
 0x260   :  { %v7852_v2 = vpack.c.bf16 %v798_v63, %v8602_v56  ;;  %v880_v3 = vsub.f32 %v792_v61, %v798_v63 }
 0x262   :  { %v881_v5 = vand.u32 4294901760, %v880_v3  ;;  %7853 = vmatpush3.bf16.xpose.msra.mxu1 %v7852_v2  ;;  %v7858_v12 = vpack.c.bf16 %v880_v3, %v8605_v58 }
 0x263   :  { %7854 = vmatprep.subr.bf16.mxu1 %v8322_v51 }
 0x264   :  { %v882_v7 = vsub.f32 %v880_v3, %v881_v5  ;;  %v7864_v13 = vpack.c.bf16 %v881_v5, %v8609_v62 }
 0x266   :  { %v883_v8 = vand.u32 4294901760, %v882_v7 }
 0x268   :  { %v7855_v11 = vpack.c.bf16 %v883_v8, %v8615_v9 }
 0x269   :  { %7316 = vmatmul.mubr.f32.vlgmr.msra.gmra.mrb[0].mxu1 %v865_v10 }
 0x26a   :  { %7856 = vmatpush3.bf16.xpose.msra.mxu1 %v7855_v11  ;;  %7322 = vmatprep.mubr.msk.f32.mxu1 %vm8323_vm1, %v8319_v0 }
 0x26b   :  { %7857 = vmatprep.subr.bf16.mxu1 %v8322_v51 }
 0x271   :  { %7323 = vmatmul.mubr.f32.vlgmr.msra.gmra.mrb[0].mxu1 %v861_v57 }
 0x272   :  { %7859 = vmatpush3.bf16.xpose.msra.mxu1 %v7858_v12  ;;  %7329 = vmatprep.mubr.msk.f32.mxu1 %vm8323_vm1, %v8319_v0 }
 0x273   :  { %7860 = vmatprep.subr.bf16.mxu1 %v8322_v51 }
 0x279   :  { %7330 = vmatmul.mubr.f32.vlgmr.msra.gmra.mrb[0].mxu1 %v862_v59 }
 0x27a   :  { %7862 = vmatpush3.bf16.xpose.msra.mxu1 %v7852_v2  ;;  %7336 = vmatprep.mubr.msk.f32.mxu1 %vm8323_vm1, %v8319_v0 }
 0x27b   :  { %7863 = vmatprep.subr.bf16.mxu1 %v8322_v51 }
 0x281   :  { %7337 = vmatmul.mubr.f32.vlgmr.msra.gmra.mrb[0].mxu1 %v863_v1 }
 0x282   :  { %7865 = vmatpush3.bf16.xpose.msra.mxu1 %v7864_v13  ;;  %7343 = vmatprep.mubr.msk.f32.mxu1 %vm8323_vm1, %v8319_v0 }
 0x283   :  { %7866 = vmatprep.subr.bf16.mxu1 %v8322_v51 }
 0x289   :  { %7344 = vmatmul.mubr.f32.vlgmr.msra.gmra.mrb[0].mxu1 %v861_v57 }
 0x28a   :  { %7868 = vmatpush3.bf16.xpose.msra.mxu1 %v7852_v2  ;;  %7350 = vmatprep.mubr.msk.f32.mxu1 %vm8323_vm1, %v8319_v0 }
 0x28b   :  { %7869 = vmatprep.subr.bf16.mxu1 %v8322_v51 }
 0x291   :  { %7351 = vmatmul.mubr.f32.vlgmr.msra.gmra.mrb[0].mxu1 %v861_v57 }
 0x292   :  { %7357 = vmatprep.mubr.msk.f32.mxu1 %vm8323_vm1, %v8319_v0 }
 0x364   :  { %v1249_v15 = vpop.f32.mrb[0].mxu1 }
 0x365   :  { %v7352_v25 = vpop.f32.mrb[1].mxu1  ;;  %v1258_v26 = vsel %vm779_vm2, -inf, %v1249_v15  ;;  %v1253_v27 = vsel %vm779_vm2, %v1249_v15, -inf }
 0x366   :  { %v1259_v32 = vsel %vm1254_vm3, %v1258_v26, -inf  ;;  %v1255_v33 = vsel %vm1254_vm3, %v1253_v27, -inf }
 0x367   :  { %1260 = vmax.xlane.f32.xlu0 %v1259_v32  ;;  %1256 = vmax.xlane.f32.xlu1 %v1255_v33 }
 0x3f4   :  { %v1261_v39 = vpop.xlane.xlu0 %1260  ;;  %v1257_v40 = vpop.xlane.xlu1 %1256 }
 0x3f5   :  { %v1262_v41 = vsel %vm779_vm2, %v1257_v40, %v1261_v39 }
 0x3f6   :  { %v1263_v42 = vsub.f32 %v1249_v15, %v1262_v41 }
 0x3f8   :  { %v1264_v43 = vmul.f32 1.442695, %v1263_v42 }
 0x3fa   :  { %8178 = vpow2.f32 %v1264_v43 }
 0x404   :  { %v8179_v44 = vpop.eup %8178 }
 0x405   :  { %v1270_v17 = vsel %vm779_vm2, 0.0, %v8179_v44  ;;  %v1266_v18 = vsel %vm779_vm2, %v8179_v44, 0.0 }
 0x406   :  { %v1271_v29 = vsel %vm1254_vm3, %v1270_v17, 0.0  ;;  %v1267_v16 = vsel %vm1254_vm3, %v1266_v18, 0.0 }
 0x407   :  { %1272 = vadd.xlane.f32.xlu1 %v1271_v29  ;;  %1268 = vadd.xlane.f32.xlu0 %v1267_v16 }
 0x418   :  { %1279 = vrot.lane.b32.xlu1 %v8595_v52, %s8324_s8 }
 0x41c   :  { %1746 = vrot.lane.b32.xlu1 %v8576_v37, %s8320_s7 }
 0x41d   :  { %1277 = vrot.lane.b32.xlu0 %v8584_v49, %s8324_s8 }
 0x420   :  { %3596 = vrot.lane.b32.xlu1 %v8586_v50, %s8320_s7 }
 0x494   :  { %v1273_v19 = vpop.xlane.xlu1 %1272  ;;  %v1269_v20 = vpop.xlane.xlu0 %1268 }
 0x495   :  { %v1274_v21 = vsel %vm779_vm2, %v1269_v20, %v1273_v19 }
 0x496   :  { %8180 = vrcp.f32 %v1274_v21 }
 0x498   :  { %v1280_v22 = vpop.permute.xlu1 %1279  ;;  %v1278_v23 = vpop.permute.xlu0 %1277 }
 0x499   :  { %v1290_v24 = vand.u32 4294901760, %v1280_v22  ;;  %v8665_v28 = vand.u32 4294901760, %v1278_v23 }
 0x49b   :  { %v7870_v30 = vpack.c.bf16 %v1290_v24, %v8665_v28  ;;  %v1372_v34 = vsub.f32 %v1280_v22, %v1290_v24  ;;  %v8669_v35 = vsub.f32 %v1278_v23, %v8665_v28 }
 0x49c   :  { %v1747_v2 = vpop.permute.xlu1 %1746 }
 0x49d   :  { %7871 = vmatpush3.bf16.msra.mxu1 %v7870_v30  ;;  %v1373_v38 = vand.u32 4294901760, %v1372_v34  ;;  %v8673_v46 = vand.u32 4294901760, %v8669_v35  ;;  %v7876_v1 = vpack.c.bf16 %v1372_v34, %v8669_v35  ;;  %v1748_v4 = vsel %vm86_vm0, %v1747_v2, 0 }
 0x49e   :  { %7872 = vmatprep.subr.bf16.mxu1 %v8322_v51  ;;  %v1816_v5 = vand.u32 4294901760, %v1748_v4 }
 0x49f   :  { %v1374_v52 = vsub.f32 %v1372_v34, %v1373_v38  ;;  %v1367_v53 = vsub.f32 %v8669_v35, %v8673_v46  ;;  %v7882_v3 = vpack.c.bf16 %v1373_v38, %v8673_v46 }
 0x4a0   :  { %v8181_v36 = vpop.eup %8180  ;;  %v1817_v6 = vsub.f32 %v1748_v4, %v1816_v5  ;;  %v8752_v39 = vpop.permute.xlu1 %3596 }
 0x4a1   :  { %v1276_v37 = vmul.f32 %v8181_v36, %v8179_v44  ;;  %v1375_v57 = vand.u32 4294901760, %v1374_v52  ;;  %v8678_v59 = vand.u32 4294901760, %v1367_v53  ;;  %v3603_v36 = vsel %vm86_vm0, %v8574_v31, 0 }
 0x4a2   :  { %v1818_v7 = vand.u32 4294901760, %v1817_v6  ;;  %v8774_v52 = vand.u32 4294901760, %v3603_v36 }
 0x4a3   :  { %v1284_v48 = vsel %vm1254_vm3, %v1276_v37, 0  ;;  %v7873_v63 = vpack.c.bf16 %v1375_v57, %v8678_v59 }
 0x4a4   :  { %v1353_v49 = vand.u32 4294901760, %v1284_v48  ;;  %v1819_v8 = vsub.f32 %v1817_v6, %v1818_v7 }
 0x4a6   :  { %v1354_v54 = vsub.f32 %v1284_v48, %v1353_v49  ;;  %v1820_v10 = vand.u32 4294901760, %v1819_v8 }
 0x4a8   :  { %v1355_v55 = vand.u32 4294901760, %v1354_v54 }
 0x4aa   :  { %v1356_v60 = vsub.f32 %v1354_v54, %v1355_v55 }
 0x4ac   :  { %v1357_v61 = vand.u32 4294901760, %v1356_v60  ;;  %v3677_v60 = vsub.f32 %v3603_v36, %v8774_v52 }
 0x4ae   :  { %7358 = vmatmul.mubr.f32.vlgmr.msra.gmra.mrb[2].mxu1 %v1357_v61  ;;  %v3678_v4 = vand.u32 4294901760, %v3677_v60 }
 0x4af   :  { %7874 = vmatpush3.bf16.msra.mxu1 %v7873_v63  ;;  %7364 = vmatprep.mubr.msk.f32.mxu1 %vm8323_vm1, %v8319_v0 }
 0x4b0   :  { %7875 = vmatprep.subr.bf16.mxu1 %v8322_v51  ;;  %v3679_v8 = vsub.f32 %v3677_v60, %v3678_v4 }
 0x4b6   :  { %7365 = vmatmul.mubr.f32.vlgmr.msra.gmra.mrb[2].mxu1 %v1353_v49 }
 0x4b7   :  { %7877 = vmatpush3.bf16.msra.mxu1 %v7876_v1  ;;  %7371 = vmatprep.mubr.msk.f32.mxu1 %vm8323_vm1, %v8319_v0 }
 0x4b8   :  { %7878 = vmatprep.subr.bf16.mxu1 %v8322_v51 }
 0x4be   :  { %7372 = vmatmul.mubr.f32.vlgmr.msra.gmra.mrb[2].mxu1 %v1354_v54 }
 0x4bf   :  { %7880 = vmatpush3.bf16.msra.mxu1 %v7870_v30  ;;  %7378 = vmatprep.mubr.msk.f32.mxu1 %vm8323_vm1, %v8319_v0 }
 0x4c0   :  { %7881 = vmatprep.subr.bf16.mxu1 %v8322_v51 }
 0x4c6   :  { %7379 = vmatmul.mubr.f32.vlgmr.msra.gmra.mrb[2].mxu1 %v1355_v55 }
 0x4c7   :  { %7883 = vmatpush3.bf16.msra.mxu1 %v7882_v3  ;;  %7385 = vmatprep.mubr.msk.f32.mxu1 %vm8323_vm1, %v8319_v0 }
 0x4c8   :  { %7884 = vmatprep.subr.bf16.mxu1 %v8322_v51 }
 0x4ce   :  { %7386 = vmatmul.mubr.f32.vlgmr.msra.gmra.mrb[2].mxu1 %v1353_v49 }
 0x4cf   :  { %7886 = vmatpush3.bf16.msra.mxu1 %v7870_v30  ;;  %7392 = vmatprep.mubr.msk.f32.mxu1 %vm8323_vm1, %v8319_v0 }
 0x4d0   :  { %7395 = vmatprep.subr.mxu1 %v8319_v0 }
 0x4d6   :  { %7393 = vmatmul.mubr.f32.vlgmr.msra.gmra.mrb[2].mxu1 %v1353_v49 }
 0x4d7   :  { %7397 = vmatprep.mubr.msk.f32.mxu1 %vm8323_vm1, %v8319_v0 }
 0x4d8   :  { %7396 = vmatpush3.xpose.msra.mxu1 %v8602_v56 }
 0x4d9   :  { %7400 = vmatprep.subr.mxu1 %v8319_v0 }
 0x4db   :  { %7398 = vmatmul.mubr.f32.vlgmr.msra.gmra.mrb[4].mxu1 %v1820_v10 }
 0x4dc   :  { %7401 = vmatpush3.xpose.msra.mxu1 %v8615_v9  ;;  %7402 = vmatprep.mubr.msk.f32.mxu1 %vm8323_vm1, %v8319_v0  ;;  %v2208_v9 = vsel %vm86_vm0, %v8578_v45, 0 }
 0x4dd   :  { %7405 = vmatprep.subr.mxu1 %v8319_v0 }
 0x4e3   :  { %7403 = vmatmul.mubr.f32.vlgmr.msra.gmra.mrb[4].mxu1 %v1816_v5 }
 0x4e4   :  { %7406 = vmatpush3.xpose.msra.mxu1 %v8605_v58  ;;  %7407 = vmatprep.mubr.msk.f32.mxu1 %vm8323_vm1, %v8319_v0  ;;  %v2276_v58 = vand.u32 4294901760, %v2208_v9 }
 0x4e5   :  { %7410 = vmatprep.subr.mxu1 %v8319_v0 }
 0x4e6   :  { %v2277_v11 = vsub.f32 %v2208_v9, %v2276_v58 }
 0x4e8   :  { %v2278_v12 = vand.u32 4294901760, %v2277_v11 }
 0x4ea   :  { %v2279_v13 = vsub.f32 %v2277_v11, %v2278_v12 }
 0x4eb   :  { %7408 = vmatmul.mubr.f32.vlgmr.msra.gmra.mrb[4].mxu1 %v1817_v6 }
 0x4ec   :  { %7411 = vmatpush3.xpose.msra.mxu1 %v8602_v56  ;;  %7412 = vmatprep.mubr.msk.f32.mxu1 %vm8323_vm1, %v8319_v0 }
 0x4ed   :  { %7415 = vmatprep.subr.mxu1 %v8319_v0 }
 0x4f3   :  { %7413 = vmatmul.mubr.f32.vlgmr.msra.gmra.mrb[4].mxu1 %v1818_v7 }
 0x4f4   :  { %7416 = vmatpush3.xpose.msra.mxu1 %v8609_v62  ;;  %7417 = vmatprep.mubr.msk.f32.mxu1 %vm8323_vm1, %v8319_v0  ;;  %v2280_v62 = vand.u32 4294901760, %v2279_v13 }
 0x4f5   :  { %7420 = vmatprep.subr.mxu1 %v8319_v0 }
 0x4fb   :  { %7418 = vmatmul.mubr.f32.vlgmr.msra.gmra.mrb[4].mxu1 %v1816_v5 }
 0x4fc   :  { %7421 = vmatpush3.xpose.msra.mxu1 %v8602_v56  ;;  %7422 = vmatprep.mubr.msk.f32.mxu1 %vm8323_vm1, %v8319_v0 }
 0x4fd   :  { %7425 = vmatprep.subr.mxu1 %v8319_v0 }
 0x503   :  { %7423 = vmatmul.mubr.f32.vlgmr.msra.gmra.mrb[4].mxu1 %v1816_v5 }
 0x504   :  { %7426 = vmatpush3.xpose.msra.mxu1 %v1816_v5  ;;  %7427 = vmatprep.mubr.msk.f32.mxu1 %vm8323_vm1, %v8319_v0 }
 0x505   :  { %7430 = vmatprep.subr.mxu1 %v8319_v0 }
 0x507   :  { %7428 = vmatmul.mubr.f32.vlgmr.msra.gmra.mrb[6].mxu1 %v2280_v62 }
 0x508   :  { %7431 = vmatpush3.xpose.msra.mxu1 %v1820_v10  ;;  %7432 = vmatprep.mubr.msk.f32.mxu1 %vm8323_vm1, %v8319_v0 }
 0x509   :  { %7435 = vmatprep.subr.mxu1 %v8319_v0 }
 0x50f   :  { %7433 = vmatmul.mubr.f32.vlgmr.msra.gmra.mrb[6].mxu1 %v2276_v58 }
 0x510   :  { %7436 = vmatpush3.xpose.msra.mxu1 %v1817_v6  ;;  %7437 = vmatprep.mubr.msk.f32.mxu1 %vm8323_vm1, %v8319_v0 }
 0x511   :  { %7440 = vmatprep.subr.mxu1 %v8319_v0 }
 0x517   :  { %7438 = vmatmul.mubr.f32.vlgmr.msra.gmra.mrb[6].mxu1 %v2277_v11 }
 0x518   :  { %7441 = vmatpush3.xpose.msra.mxu1 %v1816_v5  ;;  %7442 = vmatprep.mubr.msk.f32.mxu1 %vm8323_vm1, %v8319_v0 }
 0x519   :  { %7445 = vmatprep.subr.mxu1 %v8319_v0 }
 0x51f   :  { %7443 = vmatmul.mubr.f32.vlgmr.msra.gmra.mrb[6].mxu1 %v2278_v12 }
 0x520   :  { %7446 = vmatpush3.xpose.msra.mxu1 %v1818_v7  ;;  %7447 = vmatprep.mubr.msk.f32.mxu1 %vm8323_vm1, %v8319_v0 }
 0x521   :  { %7450 = vmatprep.subr.mxu1 %v8319_v0 }
 0x527   :  { %7448 = vmatmul.mubr.f32.vlgmr.msra.gmra.mrb[6].mxu1 %v2276_v58 }
 0x528   :  { %7451 = vmatpush3.xpose.msra.mxu1 %v1816_v5  ;;  %7452 = vmatprep.mubr.msk.f32.mxu1 %vm8323_vm1, %v8319_v0 }
 0x529   :  { %7455 = vmatprep.subr.mxu1 %v8319_v0 }
 0x52f   :  { %7453 = vmatmul.mubr.f32.vlgmr.msra.gmra.mrb[6].mxu1 %v2276_v58  ;;  %v3680_v58 = vand.u32 4294901760, %v3679_v8 }
 0x530   :  { %7457 = vmatprep.mubr.msk.f32.mxu1 %vm8323_vm1, %v8319_v0 }
 0x5a9   :  { %v8745_v56 = vpop.f32.mrb[2].mxu1 }
 0x5aa   :  { %v7394_v15 = vpop.f32.mrb[3].mxu1 }
 0x5d6   :  { %v8747_v25 = vpop.f32.mrb[4].mxu1 }
 0x5d7   :  { %v7424_v26 = vpop.f32.mrb[5].mxu1  ;;  %v2197_v40 = vsel %vm2196_vm4, %v8747_v25, -inf }
 0x602   :  { %v2652_v27 = vpop.f32.mrb[6].mxu1 }
 0x603   :  { %v7454_v32 = vpop.f32.mrb[7].mxu1  ;;  %v2656_v33 = vsel %vm2196_vm4, %v2652_v27, -inf }
 0x604   :  { %2657 = vmax.xlane.f32.xlu0 %v2656_v33 }
 0x61a   :  { %2667 = vrot.lane.b32.xlu0 %v8578_v45, %s8321_s2 }
 0x61e   :  { %3601 = vrot.lane.b32.xlu0 %v8752_v39, %s8321_s2 }
 0x63d   :  { %2198 = vmax.xlane.f32.xlu0 %v2197_v40 }
 0x691   :  { %v2658_v41 = vpop.xlane.xlu0 %2657 }
 0x692   :  { %v2659_v42 = vsub.f32 %v2652_v27, %v2658_v41 }
 0x694   :  { %v2660_v43 = vmul.f32 1.442695, %v2659_v42 }
 0x695   :  { %v2668_v44 = vpop.permute.xlu0 %2667 }
 0x696   :  { %8182 = vpow2.f32 %v2660_v43  ;;  %v8758_v17 = vand.u32 4294901760, %v2668_v44 }
 0x698   :  { %v2751_v18 = vsub.f32 %v2668_v44, %v8758_v17  ;;  %7456 = vmatpush3.msra.mxu1 %v8758_v17 }
 0x699   :  { %7887 = vmatprep.subr.bf16.mxu1 %v8322_v51  ;;  %v3602_v23 = vpop.permute.xlu0 %3601 }
 0x69a   :  { %v2752_v45 = vand.u32 4294901760, %v2751_v18  ;;  %v3607_v34 = vsel %vm86_vm0, %v3602_v23, 0 }
 0x69b   :  { %v3613_v48 = vand.u32 4294901760, %v3607_v34 }
 0x69c   :  { %v2753_v29 = vsub.f32 %v2751_v18, %v2752_v45 }
 0x69d   :  { %v3695_v57 = vsub.f32 %v3607_v34, %v3613_v48 }
 0x69e   :  { %v2754_v16 = vand.u32 4294901760, %v2753_v29 }
 0x69f   :  { %v3696_v2 = vand.u32 4294901760, %v3695_v57 }
 0x6a0   :  { %v8183_v19 = vpop.eup %8182  ;;  %7461 = vmatpush3.msra.mxu0 %v2754_v16 }
 0x6a1   :  { %v2662_v20 = vsel %vm2196_vm4, %v8183_v19, 0.0  ;;  %7465 = vmatprep.subr.mxu0 %v8319_v0  ;;  %v3697_v7 = vsub.f32 %v3695_v57, %v3696_v2 }
 0x6a2   :  { %2663 = vadd.xlane.f32.xlu1 %v2662_v20 }
 0x6a3   :  { %v3698_v9 = vand.u32 4294901760, %v3697_v7 }
 0x6b3   :  { %3599 = vrot.lane.b32.xlu1 %v8574_v31, %s8321_s2 }
 0x6ca   :  { %v2199_v26 = vpop.xlane.xlu0 %2198 }
 0x6cb   :  { %v2200_v27 = vsub.f32 %v8747_v25, %v2199_v26 }
 0x6cd   :  { %v2201_v32 = vmul.f32 1.442695, %v2200_v27 }
 0x72f   :  { %v2664_v21 = vpop.xlane.xlu1 %2663 }
 0x730   :  { %8184 = vrcp.f32 %v2664_v21 }
 0x731   :  { %8186 = vpow2.f32 %v2201_v32 }
 0x733   :  { %v3600_v22 = vpop.permute.xlu1 %3599 }
 0x734   :  { %v3605_v24 = vsel %vm86_vm0, %v3600_v22, 0 }
 0x735   :  { %v8771_v38 = vand.u32 4294901760, %v3605_v24 }
 0x737   :  { %v8777_v54 = vsub.f32 %v3605_v24, %v8771_v38  ;;  %v7888_v6 = vpack.c.bf16 %v3613_v48, %v8771_v38 }
 0x739   :  { %v8784_v63 = vand.u32 4294901760, %v8777_v54  ;;  %v7894_v12 = vpack.c.bf16 %v3695_v57, %v8777_v54 }
 0x73a   :  { %v8185_v30 = vpop.eup %8184 }
 0x73b   :  { %v2666_v37 = vmul.f32 %v8185_v30, %v8183_v19  ;;  %v3690_v5 = vsub.f32 %v8777_v54, %v8784_v63  ;;  %v7900_v13 = vpack.c.bf16 %v3696_v2, %v8784_v63 }
 0x73d   :  { %v2671_v49 = vsel %vm2196_vm4, %v2666_v37, 0  ;;  %v8796_v10 = vand.u32 4294901760, %v3690_v5 }
 0x73e   :  { %v2739_v53 = vand.u32 4294901760, %v2671_v49 }
 0x73f   :  { %v7891_v11 = vpack.c.bf16 %v3698_v9, %v8796_v10 }
 0x740   :  { %7463 = vmatmul.mubr.f32.vlgmr.msra.gmra.mrb[8].mxu0 %v2739_v53  ;;  %v2740_v55 = vsub.f32 %v2671_v49, %v2739_v53 }
 0x741   :  { %7466 = vmatpush3.msra.mxu0 %v2751_v18  ;;  %7467 = vmatprep.mubr.msk.f32.mxu0 %vm8323_vm1, %v8319_v0 }
 0x742   :  { %7470 = vmatprep.subr.mxu0 %v8319_v0  ;;  %v2741_v61 = vand.u32 4294901760, %v2740_v55 }
 0x744   :  { %v2742_v1 = vsub.f32 %v2740_v55, %v2741_v61 }
 0x746   :  { %v2743_v3 = vand.u32 4294901760, %v2742_v1 }
 0x748   :  { %7458 = vmatmul.mubr.f32.vlgmr.msra.gmra.mrb[8].mxu1 %v2743_v3  ;;  %7468 = vmatmul.mubr.f32.vlgmr.msra.gmra.mrb[8].mxu0 %v2740_v55 }
 0x749   :  { %7471 = vmatpush3.msra.mxu0 %v8758_v17  ;;  %7889 = vmatpush3.bf16.xpose.msra.mxu1 %v7888_v6 }
 0x74a   :  { %7519 = vmatprep.mubr.msk.f32.mxu1 %vm8323_vm1, %v8319_v0  ;;  %7472 = vmatprep.mubr.msk.f32.mxu0 %vm8323_vm1, %v8319_v0 }
 0x74b   :  { %7475 = vmatprep.subr.mxu0 %v8319_v0  ;;  %7890 = vmatprep.subr.bf16.mxu1 %v8322_v51 }
 0x750   :  { %7520 = vmatmul.mubr.f32.vlgmr.msra.gmra.mrb[10].mxu1 %v3680_v58  ;;  %7473 = vmatmul.mubr.f32.vlgmr.msra.gmra.mrb[8].mxu0 %v2741_v61 }
 0x751   :  { %7476 = vmatpush3.msra.mxu0 %v2752_v45  ;;  %7892 = vmatpush3.bf16.xpose.msra.mxu1 %v7891_v11 }
 0x752   :  { %7526 = vmatprep.mubr.msk.f32.mxu1 %vm8323_vm1, %v8319_v0  ;;  %7477 = vmatprep.mubr.msk.f32.mxu0 %vm8323_vm1, %v8319_v0 }
 0x753   :  { %7480 = vmatprep.subr.mxu0 %v8319_v0  ;;  %7893 = vmatprep.subr.bf16.mxu1 %v8322_v51 }
 0x758   :  { %7527 = vmatmul.mubr.f32.vlgmr.msra.gmra.mrb[10].mxu1 %v8774_v52  ;;  %7478 = vmatmul.mubr.f32.vlgmr.msra.gmra.mrb[8].mxu0 %v2739_v53 }
 0x759   :  { %7481 = vmatpush3.msra.mxu0 %v8758_v17  ;;  %7895 = vmatpush3.bf16.xpose.msra.mxu1 %v7894_v12  ;;  %v8187_v17 = vpop.eup %8186 }
 0x75a   :  { %7533 = vmatprep.mubr.msk.f32.mxu1 %vm8323_vm1, %v8319_v0  ;;  %7482 = vmatprep.mubr.msk.f32.mxu0 %vm8323_vm1, %v8319_v0  ;;  %v2203_v18 = vsel %vm2196_vm4, %v8187_v17, 0.0 }
 0x75b   :  { %7485 = vmatprep.subr.mxu0 %v8319_v0  ;;  %7896 = vmatprep.subr.bf16.mxu1 %v8322_v51 }
 0x760   :  { %7534 = vmatmul.mubr.f32.vlgmr.msra.gmra.mrb[10].mxu1 %v3677_v60  ;;  %7483 = vmatmul.mubr.f32.vlgmr.msra.gmra.mrb[8].mxu0 %v2739_v53 }
 0x761   :  { %7486 = vmatpush3.msra.mxu0 %v8665_v28  ;;  %7898 = vmatpush3.bf16.xpose.msra.mxu1 %v7888_v6 }
 0x762   :  { %7540 = vmatprep.mubr.msk.f32.mxu1 %vm8323_vm1, %v8319_v0  ;;  %7899 = vmatprep.subr.bf16.mxu1 %v8322_v51 }
 0x763   :  { %7487 = vmatprep.mubr.msk.f32.mxu0 %vm8323_vm1, %v8319_v0  ;;  %7490 = vmatprep.subr.mxu0 %v8319_v0 }
 0x768   :  { %7541 = vmatmul.mubr.f32.vlgmr.msra.gmra.mrb[10].mxu1 %v3678_v4 }
 0x769   :  { %7901 = vmatpush3.bf16.xpose.msra.mxu1 %v7900_v13  ;;  %7547 = vmatprep.mubr.msk.f32.mxu1 %vm8323_vm1, %v8319_v0 }
 0x76a   :  { %7902 = vmatprep.subr.bf16.mxu1 %v8322_v51 }
 0x770   :  { %7548 = vmatmul.mubr.f32.vlgmr.msra.gmra.mrb[10].mxu1 %v8774_v52 }
 0x771   :  { %7904 = vmatpush3.bf16.xpose.msra.mxu1 %v7888_v6  ;;  %7554 = vmatprep.mubr.msk.f32.mxu1 %vm8323_vm1, %v8319_v0 }
 0x772   :  { %7599 = vmatprep.subr.mxu1 %v8319_v0 }
 0x778   :  { %7555 = vmatmul.mubr.f32.vlgmr.msra.gmra.mrb[10].mxu1 %v8774_v52 }
 0x779   :  { %7600 = vmatpush3.xpose.msra.mxu1 %v8771_v38  ;;  %7601 = vmatprep.mubr.msk.f32.mxu1 %vm8323_vm1, %v8319_v0 }
 0x77a   :  { %7604 = vmatprep.subr.mxu1 %v8319_v0 }
 0x81b   :  { %v8834_v62 = vpop.f32.mrb[8].mxu1 }
 0x81c   :  { %v7459_v15 = vpop.f32.mrb[9].mxu1 }
 0x84b   :  { %v4064_v33 = vpop.f32.mrb[10].mxu1 }
 0x84c   :  { %v7556_v40 = vpop.f32.mrb[11].mxu1  ;;  %v4072_v41 = vsel %vm779_vm2, -inf, %v4064_v33  ;;  %v4068_v42 = vsel %vm779_vm2, %v4064_v33, -inf }
 0x84d   :  { %v4073_v43 = vsel %vm1254_vm3, %v4072_v41, -inf  ;;  %v4069_v44 = vsel %vm1254_vm3, %v4068_v42, -inf }
 0x84e   :  { %4074 = vmax.xlane.f32.xlu0 %v4073_v43  ;;  %4070 = vmax.xlane.f32.xlu1 %v4069_v44  ;;  %v5021_v43 = vsel %vm86_vm0, %v8586_v50, 0 }
 0x852   :  { %2204 = vadd.xlane.f32.xlu0 %v2203_v18 }
 0x8db   :  { %v4075_v25 = vpop.xlane.xlu0 %4074  ;;  %v4071_v45 = vpop.xlane.xlu1 %4070 }
 0x8dc   :  { %v4076_v29 = vsel %vm779_vm2, %v4071_v45, %v4075_v25 }
 0x8dd   :  { %v4077_v16 = vsub.f32 %v4064_v33, %v4076_v29 }
 0x8df   :  { %v4078_v19 = vmul.f32 1.442695, %v4077_v16  ;;  %v2205_v20 = vpop.xlane.xlu0 %2204 }
 0x8e0   :  { %8188 = vrcp.f32 %v2205_v20 }
 0x8e1   :  { %8190 = vpow2.f32 %v4078_v19 }
 0x8ea   :  { %v8189_v21 = vpop.eup %8188 }
 0x8eb   :  { %v8191_v22 = vpop.eup %8190  ;;  %v2207_v23 = vmul.f32 %v8189_v21, %v8187_v17 }
 0x8ec   :  { %v4084_v24 = vsel %vm779_vm2, 0.0, %v8191_v22  ;;  %v4080_v30 = vsel %vm779_vm2, %v8191_v22, 0.0 }
 0x8ed   :  { %v4085_v34 = vsel %vm1254_vm3, %v4084_v24, 0.0  ;;  %v4081_v36 = vsel %vm1254_vm3, %v4080_v30, 0.0  ;;  %v3120_v37 = vsel %vm2196_vm4, %v2207_v23, 0 }
 0x8ee   :  { %4086 = vadd.xlane.f32.xlu0 %v4085_v34  ;;  %4082 = vadd.xlane.f32.xlu1 %v4081_v36  ;;  %v3188_v48 = vand.u32 4294901760, %v3120_v37 }
 0x8f0   :  { %v3189_v49 = vsub.f32 %v3120_v37, %v3188_v48 }
 0x8f2   :  { %v3190_v52 = vand.u32 4294901760, %v3189_v49 }
 0x8f4   :  { %v3191_v53 = vsub.f32 %v3189_v49, %v3190_v52 }
 0x8f6   :  { %v3192_v55 = vand.u32 4294901760, %v3191_v53 }
 0x8f8   :  { %7488 = vmatmul.mubr.f32.vlgmr.msra.gmra.mrb[8].mxu0 %v3192_v55 }
 0x8f9   :  { %7491 = vmatpush3.msra.mxu0 %v8678_v59  ;;  %7492 = vmatprep.mubr.msk.f32.mxu0 %vm8323_vm1, %v8319_v0 }
 0x8fa   :  { %7495 = vmatprep.subr.mxu0 %v8319_v0 }
 0x8ff   :  { %4091 = vrot.lane.b32.xlu1 %v8574_v31, %s8324_s8 }
 0x900   :  { %7493 = vmatmul.mubr.f32.vlgmr.msra.gmra.mrb[8].mxu0 %v3188_v48 }
 0x901   :  { %7496 = vmatpush3.msra.mxu0 %v8669_v35  ;;  %7497 = vmatprep.mubr.msk.f32.mxu0 %vm8323_vm1, %v8319_v0 }
 0x902   :  { %7500 = vmatprep.subr.mxu0 %v8319_v0 }
 0x903   :  { %4560 = vrot.lane.b32.xlu1 %v8582_v47, %s8320_s7 }
 0x904   :  { %4093 = vrot.lane.b32.xlu0 %v8752_v39, %s8324_s8 }
 0x908   :  { %7498 = vmatmul.mubr.f32.vlgmr.msra.gmra.mrb[8].mxu0 %v3189_v49 }
 0x909   :  { %7501 = vmatpush3.msra.mxu0 %v8665_v28  ;;  %7502 = vmatprep.mubr.msk.f32.mxu0 %vm8323_vm1, %v8319_v0 }
 0x90a   :  { %7505 = vmatprep.subr.mxu0 %v8319_v0 }
 0x910   :  { %7503 = vmatmul.mubr.f32.vlgmr.msra.gmra.mrb[8].mxu0 %v3190_v52 }
 0x911   :  { %7506 = vmatpush3.msra.mxu0 %v8673_v46  ;;  %7507 = vmatprep.mubr.msk.f32.mxu0 %vm8323_vm1, %v8319_v0 }
 0x912   :  { %7510 = vmatprep.subr.mxu0 %v8319_v0 }
 0x918   :  { %7508 = vmatmul.mubr.f32.vlgmr.msra.gmra.mrb[8].mxu0 %v3188_v48 }
 0x919   :  { %7511 = vmatpush3.msra.mxu0 %v8665_v28  ;;  %7512 = vmatprep.mubr.msk.f32.mxu0 %vm8323_vm1, %v8319_v0 }
 0x91a   :  { %7905 = vmatprep.subr.bf16.mxu0 %v8322_v51 }
 0x920   :  { %7513 = vmatmul.mubr.f32.vlgmr.msra.gmra.mrb[8].mxu0 %v3188_v48 }
 0x921   :  { %7561 = vmatprep.mubr.msk.f32.mxu0 %vm8323_vm1, %v8319_v0 }
 0x97b   :  { %v4087_v31 = vpop.xlane.xlu0 %4086  ;;  %v4083_v47 = vpop.xlane.xlu1 %4082 }
 0x97c   :  { %v4088_v35 = vsel %vm779_vm2, %v4083_v47, %v4087_v31  ;;  %v3568_v47 = vsel %vm86_vm0, %v8745_v56, 0.0 }
 0x97d   :  { %8192 = vrcp.f32 %v4088_v35 }
 0x97f   :  { %v4094_v46 = vpop.permute.xlu0 %4093  ;;  %v4092_v59 = vpop.permute.xlu1 %4091 }
 0x980   :  { %v4104_v39 = vand.u32 4294901760, %v4094_v46  ;;  %v8883_v57 = vand.u32 4294901760, %v4092_v59 }
 0x982   :  { %v8886_v28 = vpack.c.bf16 %v4104_v39, %v8883_v57  ;;  %v4186_v61 = vsub.f32 %v4094_v46, %v4104_v39  ;;  %v8889_v1 = vsub.f32 %v4092_v59, %v8883_v57 }
 0x983   :  { %v4561_v60 = vpop.permute.xlu1 %4560 }
 0x984   :  { %v4562_v2 = vsel %vm86_vm0, %v4561_v60, 0  ;;  %7907 = vmatpush3.bf16.msra.mxu0 %v8886_v28  ;;  %v4187_v6 = vand.u32 4294901760, %v4186_v61  ;;  %v8900_v7 = vand.u32 4294901760, %v8889_v1 }
 0x985   :  { %v8893_v14 = vand.u32 4294901760, %v4562_v2  ;;  %7908 = vmatprep.subr.bf16.mxu0 %v8322_v51 }
 0x986   :  { %v4188_v12 = vsub.f32 %v4186_v61, %v4187_v6  ;;  %v4181_v13 = vsub.f32 %v8889_v1, %v8900_v7 }
 0x987   :  { %v8193_v3 = vpop.eup %8192  ;;  %v8897_v4 = vsub.f32 %v4562_v2, %v8893_v14 }
 0x988   :  { %v4090_v5 = vmul.f32 %v8193_v3, %v8191_v22  ;;  %v4189_v32 = vand.u32 4294901760, %v4188_v12  ;;  %v8911_v33 = vand.u32 4294901760, %v4181_v13 }
 0x989   :  { %v8903_v8 = vand.u32 4294901760, %v8897_v4 }
 0x98a   :  { %v4098_v9 = vsel %vm1254_vm3, %v4090_v5, 0  ;;  %v7909_v42 = vpack.c.bf16 %v4189_v32, %v8911_v33 }
 0x98b   :  { %v4633_v58 = vsub.f32 %v8897_v4, %v8903_v8  ;;  %v4167_v11 = vand.u32 4294901760, %v4098_v9 }
 0x98d   :  { %v4634_v15 = vand.u32 4294901760, %v4633_v58  ;;  %v4168_v26 = vsub.f32 %v4098_v9, %v4167_v11 }
 0x98f   :  { %7602 = vmatmul.mubr.f32.vlgmr.msra.gmra.mrb[12].mxu1 %v4634_v15  ;;  %v4169_v27 = vand.u32 4294901760, %v4168_v26 }
 0x990   :  { %7605 = vmatpush3.xpose.msra.mxu1 %v8796_v10  ;;  %7606 = vmatprep.mubr.msk.f32.mxu1 %vm8323_vm1, %v8319_v0  ;;  %v7912_v10 = vpack.c.bf16 %v4186_v61, %v8889_v1 }
 0x991   :  { %v4170_v40 = vsub.f32 %v4168_v26, %v4169_v27  ;;  %7609 = vmatprep.subr.mxu1 %v8319_v0 }
 0x993   :  { %v4171_v41 = vand.u32 4294901760, %v4170_v40 }
 0x995   :  { %7562 = vmatmul.mubr.f32.vlgmr.msra.gmra.mrb[10].mxu0 %v4171_v41 }
 0x996   :  { %7910 = vmatpush3.bf16.msra.mxu0 %v7909_v42  ;;  %7568 = vmatprep.mubr.msk.f32.mxu0 %vm8323_vm1, %v8319_v0 }
 0x997   :  { %7607 = vmatmul.mubr.f32.vlgmr.msra.gmra.mrb[12].mxu1 %v8893_v14  ;;  %7911 = vmatprep.subr.bf16.mxu0 %v8322_v51 }
 0x998   :  { %7610 = vmatpush3.xpose.msra.mxu1 %v8777_v54  ;;  %7611 = vmatprep.mubr.msk.f32.mxu1 %vm8323_vm1, %v8319_v0  ;;  %v7918_v54 = vpack.c.bf16 %v4187_v6, %v8900_v7 }
 0x999   :  { %7614 = vmatprep.subr.mxu1 %v8319_v0 }
 0x99d   :  { %7569 = vmatmul.mubr.f32.vlgmr.msra.gmra.mrb[10].mxu0 %v4167_v11 }
 0x99e   :  { %7913 = vmatpush3.bf16.msra.mxu0 %v7912_v10  ;;  %7575 = vmatprep.mubr.msk.f32.mxu0 %vm8323_vm1, %v8319_v0 }
 0x99f   :  { %7612 = vmatmul.mubr.f32.vlgmr.msra.gmra.mrb[12].mxu1 %v8897_v4  ;;  %7914 = vmatprep.subr.bf16.mxu0 %v8322_v51 }
 0x9a0   :  { %7615 = vmatpush3.xpose.msra.mxu1 %v8771_v38  ;;  %7616 = vmatprep.mubr.msk.f32.mxu1 %vm8323_vm1, %v8319_v0 }
 0x9a1   :  { %7619 = vmatprep.subr.mxu1 %v8319_v0 }
 0x9a5   :  { %7576 = vmatmul.mubr.f32.vlgmr.msra.gmra.mrb[10].mxu0 %v4168_v26 }
 0x9a6   :  { %7916 = vmatpush3.bf16.msra.mxu0 %v8886_v28  ;;  %7582 = vmatprep.mubr.msk.f32.mxu0 %vm8323_vm1, %v8319_v0 }
 0x9a7   :  { %7617 = vmatmul.mubr.f32.vlgmr.msra.gmra.mrb[12].mxu1 %v8903_v8  ;;  %7917 = vmatprep.subr.bf16.mxu0 %v8322_v51 }
 0x9a8   :  { %7620 = vmatpush3.xpose.msra.mxu1 %v8784_v63  ;;  %7621 = vmatprep.mubr.msk.f32.mxu1 %vm8323_vm1, %v8319_v0  ;;  %v5089_v63 = vand.u32 4294901760, %v5021_v43 }
 0x9a9   :  { %7624 = vmatprep.subr.mxu1 %v8319_v0 }
 0x9aa   :  { %v5090_v44 = vsub.f32 %v5021_v43, %v5089_v63 }
 0x9ad   :  { %7583 = vmatmul.mubr.f32.vlgmr.msra.gmra.mrb[10].mxu0 %v4169_v27 }
 0x9ae   :  { %7919 = vmatpush3.bf16.msra.mxu0 %v7918_v54  ;;  %7589 = vmatprep.mubr.msk.f32.mxu0 %vm8323_vm1, %v8319_v0 }
 0x9af   :  { %7622 = vmatmul.mubr.f32.vlgmr.msra.gmra.mrb[12].mxu1 %v8893_v14  ;;  %7920 = vmatprep.subr.bf16.mxu0 %v8322_v51  ;;  %v5091_v51 = vand.u32 4294901760, %v5090_v44 }
 0x9b0   :  { %7625 = vmatpush3.xpose.msra.mxu1 %v8771_v38  ;;  %7626 = vmatprep.mubr.msk.f32.mxu1 %vm8323_vm1, %v8319_v0 }
 0x9b1   :  { %7659 = vmatprep.subr.mxu1 %v8319_v0  ;;  %v5092_v38 = vsub.f32 %v5090_v44, %v5091_v51 }
 0x9b3   :  { %v5093_v17 = vand.u32 4294901760, %v5092_v38  ;;  %v9026_v38 = vld [vmem:[#allocation7] sm:$0xff] }
 0x9b5   :  { %7590 = vmatmul.mubr.f32.vlgmr.msra.gmra.mrb[10].mxu0 %v4167_v11 }
 0x9b6   :  { %7922 = vmatpush3.bf16.msra.mxu0 %v8886_v28  ;;  %7596 = vmatprep.mubr.msk.f32.mxu0 %vm8323_vm1, %v8319_v0 }
 0x9b7   :  { %7627 = vmatmul.mubr.f32.vlgmr.msra.gmra.mrb[12].mxu1 %v8893_v14  ;;  %7629 = vmatprep.subr.mxu0 %v8319_v0 }
 0x9b8   :  { %7661 = vmatprep.mubr.msk.f32.mxu1 %vm8323_vm1, %v8319_v0 }
 0x9bd   :  { %7597 = vmatmul.mubr.f32.vlgmr.msra.gmra.mrb[10].mxu0 %v4167_v11 }
 0x9be   :  { %7631 = vmatprep.mubr.msk.f32.mxu0 %vm8323_vm1, %v8319_v0 }
 0x9bf   :  { %7630 = vmatpush3.xpose.msra.mxu0 %v8893_v14 }
 0x9c0   :  { %7634 = vmatprep.subr.mxu0 %v8319_v0 }
 0x9c2   :  { %7632 = vmatmul.mubr.f32.vlgmr.msra.gmra.mrb[12].mxu0 %v5093_v17  ;;  %v9028_v17 = vld [vmem:[#allocation7 + $0x8] sm:$0xff] }
 0x9c3   :  { %7635 = vmatpush3.xpose.msra.mxu0 %v4634_v15  ;;  %7636 = vmatprep.mubr.msk.f32.mxu0 %vm8323_vm1, %v8319_v0 }
 0x9c4   :  { %7639 = vmatprep.subr.mxu0 %v8319_v0 }
 0x9ca   :  { %7637 = vmatmul.mubr.f32.vlgmr.msra.gmra.mrb[12].mxu0 %v5089_v63 }
 0x9cb   :  { %7640 = vmatpush3.xpose.msra.mxu0 %v8897_v4  ;;  %7641 = vmatprep.mubr.msk.f32.mxu0 %vm8323_vm1, %v8319_v0 }
 0x9cc   :  { %7644 = vmatprep.subr.mxu0 %v8319_v0 }
 0x9d2   :  { %7642 = vmatmul.mubr.f32.vlgmr.msra.gmra.mrb[12].mxu0 %v5090_v44 }
 0x9d3   :  { %7645 = vmatpush3.xpose.msra.mxu0 %v8893_v14  ;;  %7646 = vmatprep.mubr.msk.f32.mxu0 %vm8323_vm1, %v8319_v0 }
 0x9d4   :  { %7649 = vmatprep.subr.mxu0 %v8319_v0 }
 0x9da   :  { %7647 = vmatmul.mubr.f32.vlgmr.msra.gmra.mrb[12].mxu0 %v5091_v51 }
 0x9db   :  { %7650 = vmatpush3.xpose.msra.mxu0 %v8903_v8  ;;  %7651 = vmatprep.mubr.msk.f32.mxu0 %vm8323_vm1, %v8319_v0 }
 0x9dc   :  { %7654 = vmatprep.subr.mxu0 %v8319_v0 }
 0x9e2   :  { %7652 = vmatmul.mubr.f32.vlgmr.msra.gmra.mrb[12].mxu0 %v5089_v63 }
 0x9e3   :  { %7655 = vmatpush3.xpose.msra.mxu0 %v8893_v14  ;;  %7656 = vmatprep.mubr.msk.f32.mxu0 %vm8323_vm1, %v8319_v0 }
 0x9ea   :  { %7657 = vmatmul.mubr.f32.vlgmr.msra.gmra.mrb[12].mxu0 %v5089_v63 }
 0x9f3   :  { %v3564_v18 = vpop.f32.mrb[8].mxu0 }
 0x9f4   :  { %v7977_v25 = vadd.f32 %v3564_v18, %v8834_v62  ;;  %v7514_v45 = vpop.f32.mrb[9].mxu0  ;;  %v9030_v18 = vld [vmem:[#allocation7 + $0x10] sm:$0xff] }
 0x9f5   :  { %v6434_v45 = vand.u32 4294901760, %v9028_v17 }
 0x9f6   :  { %v3582_v35 = vsel %vm86_vm0, %v7977_v25, 0.0 }
 0xa8a   :  { %v5006_v29 = vpop.f32.mrb[12].mxu1 }
 0xa8b   :  { %v7628_v16 = vpop.f32.mrb[13].mxu1  ;;  %v5010_v19 = vsel %vm2196_vm4, %v5006_v29, -inf }
 0xa8c   :  { %5011 = vmax.xlane.f32.xlu0 %v5010_v19  ;;  %v6437_v16 = vand.u32 4294901760, %v9030_v18 }
 0xa90   :  { %v4555_v20 = vpop.f32.mrb[10].mxu0 }
 0xa91   :  { %v7598_v21 = vpop.f32.mrb[11].mxu0  ;;  %v6381_v46 = vsel %vm86_vm0, %v4555_v20, 0.0 }
 0xabd   :  { %v5465_v22 = vpop.f32.mrb[12].mxu0 }
 0xabe   :  { %v7658_v23 = vpop.f32.mrb[13].mxu0  ;;  %v5469_v24 = vsel %vm2196_vm4, %v5465_v22, -inf }
 0xabf   :  { %5470 = vmax.xlane.f32.xlu1 %v5469_v24 }
 0xad0   :  { %5480 = vrot.lane.b32.xlu1 %v8586_v50, %s8321_s2 }
 0xb19   :  { %v5012_v30 = vpop.xlane.xlu0 %5011 }
 0xb1a   :  { %v5013_v34 = vsub.f32 %v5006_v29, %v5012_v30  ;;  %v9036_v29 = vld [vmem:[#allocation7 + $0x18] sm:$0xff] }
 0xb1b   :  { %v6440_v19 = vand.u32 4294901760, %v9036_v29 }
 0xb1c   :  { %v5014_v37 = vmul.f32 1.442695, %v5013_v34 }
 0xb4c   :  { %v5471_v36 = vpop.xlane.xlu1 %5470 }
 0xb4d   :  { %v5472_v62 = vsub.f32 %v5465_v22, %v5471_v36  ;;  %v9052_v22 = vpack.c.bf16 %v6440_v19, %v6437_v16 }
 0xb4f   :  { %v5473_v48 = vmul.f32 1.442695, %v5472_v62 }
 0xb50   :  { %v5481_v49 = vpop.permute.xlu1 %5480 }
 0xb51   :  { %8194 = vpow2.f32 %v5473_v48  ;;  %v8988_v52 = vand.u32 4294901760, %v5481_v49 }
 0xb52   :  { %8196 = vpow2.f32 %v5014_v37 }
 0xb53   :  { %7660 = vmatpush3.msra.mxu1 %v8988_v52  ;;  %v5564_v14 = vsub.f32 %v5481_v49, %v8988_v52 }
 0xb54   :  { %7664 = vmatprep.subr.mxu1 %v8319_v0 }
 0xb55   :  { %v5565_v12 = vand.u32 4294901760, %v5564_v14 }
 0xb57   :  { %v5566_v41 = vsub.f32 %v5564_v14, %v5565_v12 }
 0xb59   :  { %v5567_v63 = vand.u32 4294901760, %v5566_v41 }
 0xb5b   :  { %v8195_v53 = vpop.eup %8194 }
 0xb5c   :  { %v5475_v55 = vsel %vm2196_vm4, %v8195_v53, 0.0  ;;  %v8197_v31 = vpop.eup %8196 }
 0xb5d   :  { %5476 = vadd.xlane.f32.xlu0 %v5475_v55  ;;  %v5016_v50 = vsel %vm2196_vm4, %v8197_v31, 0.0 }
 0xb61   :  { %5017 = vadd.xlane.f32.xlu0 %v5016_v50 }
 0xb65   :  { %3569 = vadd.xlane.f32.xlu0 %v3568_v47 }
 0xb69   :  { %3583 = vadd.xlane.f32.xlu0 %v3582_v35 }
 0xb6d   :  { %6382 = vadd.xlane.f32.xlu0 %v6381_v46 }
 0xbea   :  { %v5477_v59 = vpop.xlane.xlu0 %5476 }
 0xbeb   :  { %8198 = vrcp.f32 %v5477_v59 }
 0xbee   :  { %v5018_v39 = vpop.xlane.xlu0 %5017 }
 0xbef   :  { %8200 = vrcp.f32 %v5018_v39 }
 0xbf2   :  { %v3570_v28 = vpop.xlane.xlu0 %3569 }
 0xbf3   :  { %v3572_v60 = vmul.f32 0.03125, %v3570_v28 }
 0xbf5   :  { %v8199_v61 = vpop.eup %8198  ;;  %v8999_v2 = vsub.f32 %v8745_v56, %v3572_v60 }
 0xbf6   :  { %v5479_v3 = vmul.f32 %v8199_v61, %v8195_v53  ;;  %v3584_v4 = vpop.xlane.xlu0 %3583 }
 0xbf7   :  { %v3585_v5 = vmul.f32 0.03125, %v3584_v4  ;;  %v3574_v6 = vmul.f32 %v8999_v2, %v8999_v2 }
 0xbf8   :  { %v5484_v8 = vsel %vm2196_vm4, %v5479_v3, 0 }
 0xbf9   :  { %v9005_v9 = vsub.f32 %v7977_v25, %v3585_v5  ;;  %v3575_v58 = vsel %vm86_vm0, %v3574_v6, 0.0  ;;  %v5552_v11 = vand.u32 4294901760, %v5484_v8  ;;  %v8201_v44 = vpop.eup %8200  ;;  %v6431_v25 = vand.u32 4294901760, %v9026_v38 }
 0xbfa   :  { %3576 = vadd.xlane.f32.xlu0 %v3575_v58  ;;  %v6383_v13 = vpop.xlane.xlu0 %6382  ;;  %v5020_v51 = vmul.f32 %v8201_v44, %v8197_v31 }
 0xbfb   :  { %v6384_v56 = vmul.f32 0.03125, %v6383_v13  ;;  %v3587_v15 = vmul.f32 %v9005_v9, %v9005_v9  ;;  %v5553_v26 = vsub.f32 %v5484_v8, %v5552_v11  ;;  %v9046_v21 = vpack.c.bf16 %v6434_v45, %v6431_v25 }
 0xbfd   :  { %v9010_v27 = vsub.f32 %v4555_v20, %v6384_v56  ;;  %v3588_v32 = vsel %vm86_vm0, %v3587_v15, 0.0  ;;  %v5554_v40 = vand.u32 4294901760, %v5553_v26  ;;  %v5933_v20 = vsel %vm2196_vm4, %v5020_v51, 0  ;;  %7924 = vmatprep.subr.bf16.mxu0 %v9046_v21 }
 0xbfe   :  { %3589 = vadd.xlane.f32.xlu0 %v3588_v32  ;;  %v6001_v23 = vand.u32 4294901760, %v5933_v20  ;;  %7926 = vmatpush3.bf16.msra.mxu0 %v9046_v21  ;;  %v6555_v51 = vsub.f32 %v9030_v18, %v6437_v16 }
 0xbff   :  { %v6386_v42 = vmul.f32 %v9010_v27, %v9010_v27  ;;  %v5555_v10 = vsub.f32 %v5553_v26, %v5554_v40  ;;  %7928 = vmatprep.subr.bf16.mxu0 %v9052_v22 }
 0xc00   :  { %v6002_v24 = vsub.f32 %v5933_v20, %v6001_v23  ;;  %v6562_v20 = vsub.f32 %v9036_v29, %v6440_v19 }
 0xc01   :  { %v6387_v54 = vsel %vm86_vm0, %v6386_v42, 0.0  ;;  %v5556_v43 = vand.u32 4294901760, %v5555_v10  ;;  %v6541_v42 = vsub.f32 %v9026_v38, %v6431_v25  ;;  %v6548_v10 = vsub.f32 %v9028_v17, %v6434_v45 }
 0xc02   :  { %6388 = vadd.xlane.f32.xlu0 %v6387_v54  ;;  %7930 = vmatpush3.bf16.msra.mxu0 %v9052_v22  ;;  %v6003_v30 = vand.u32 4294901760, %v6002_v24  ;;  %v6563_v38 = vand.u32 4294901760, %v6562_v20  ;;  %v7943_v18 = vpack.c.bf16 %v6562_v20, %v6555_v51 }
 0xc03   :  { %7662 = vmatmul.mubr.f32.vlgmr.msra.gmra.mrb[14].mxu1 %v5556_v43  ;;  %v6542_v54 = vand.u32 4294901760, %v6541_v42  ;;  %v6549_v43 = vand.u32 4294901760, %v6548_v10 }
 0xc04   :  { %7665 = vmatpush3.msra.mxu1 %v5567_v63  ;;  %7666 = vmatprep.mubr.msk.f32.mxu1 %vm8323_vm1, %v8319_v0  ;;  %v6004_v34 = vsub.f32 %v6002_v24, %v6003_v30 }
 0xc05   :  { %7669 = vmatprep.subr.mxu1 %v8319_v0  ;;  %v6543_v63 = vsub.f32 %v6541_v42, %v6542_v54  ;;  %v6550_v44 = vsub.f32 %v6548_v10, %v6549_v43  ;;  %v7955_v16 = vpack.c.bf16 %v6549_v43, %v6542_v54 }
 0xc06   :  { %v6005_v36 = vand.u32 4294901760, %v6004_v34 }
 0xc0b   :  { %7667 = vmatmul.mubr.f32.vlgmr.msra.gmra.mrb[14].mxu1 %v5552_v11 }
 0xc0c   :  { %7670 = vmatpush3.msra.mxu1 %v5564_v14  ;;  %7671 = vmatprep.mubr.msk.f32.mxu1 %vm8323_vm1, %v8319_v0 }
 0xc0d   :  { %7674 = vmatprep.subr.mxu1 %v8319_v0 }
 0xc13   :  { %7672 = vmatmul.mubr.f32.vlgmr.msra.gmra.mrb[14].mxu1 %v5553_v26 }
 0xc14   :  { %7675 = vmatpush3.msra.mxu1 %v8988_v52  ;;  %7676 = vmatprep.mubr.msk.f32.mxu1 %vm8323_vm1, %v8319_v0 }
 0xc15   :  { %7679 = vmatprep.subr.mxu1 %v8319_v0 }
 0xc1b   :  { %7677 = vmatmul.mubr.f32.vlgmr.msra.gmra.mrb[14].mxu1 %v5554_v40 }
 0xc1c   :  { %7680 = vmatpush3.msra.mxu1 %v5565_v12  ;;  %7681 = vmatprep.mubr.msk.f32.mxu1 %vm8323_vm1, %v8319_v0 }
 0xc1d   :  { %7684 = vmatprep.subr.mxu1 %v8319_v0 }
 0xc23   :  { %7682 = vmatmul.mubr.f32.vlgmr.msra.gmra.mrb[14].mxu1 %v5552_v11 }
 0xc24   :  { %7685 = vmatpush3.msra.mxu1 %v8988_v52  ;;  %7686 = vmatprep.mubr.msk.f32.mxu1 %vm8323_vm1, %v8319_v0 }
 0xc25   :  { %7689 = vmatprep.subr.mxu1 %v8319_v0 }
 0xc2b   :  { %7687 = vmatmul.mubr.f32.vlgmr.msra.gmra.mrb[14].mxu1 %v5552_v11 }
 0xc2c   :  { %7690 = vmatpush3.msra.mxu1 %v8883_v57  ;;  %7691 = vmatprep.mubr.msk.f32.mxu1 %vm8323_vm1, %v8319_v0 }
 0xc2d   :  { %7694 = vmatprep.subr.mxu1 %v8319_v0 }
 0xc33   :  { %7692 = vmatmul.mubr.f32.vlgmr.msra.gmra.mrb[14].mxu1 %v6005_v36  ;;  %v6564_v36 = vsub.f32 %v6562_v20, %v6563_v38 }
 0xc34   :  { %7695 = vmatpush3.msra.mxu1 %v8911_v33  ;;  %7696 = vmatprep.mubr.msk.f32.mxu1 %vm8323_vm1, %v8319_v0 }
 0xc35   :  { %7699 = vmatprep.subr.mxu1 %v8319_v0  ;;  %v6565_v45 = vand.u32 4294901760, %v6564_v36 }
 0xc3b   :  { %7697 = vmatmul.mubr.f32.vlgmr.msra.gmra.mrb[14].mxu1 %v6001_v23 }
 0xc3c   :  { %7700 = vmatpush3.msra.mxu1 %v8889_v1  ;;  %7701 = vmatprep.mubr.msk.f32.mxu1 %vm8323_vm1, %v8319_v0 }
 0xc3d   :  { %7704 = vmatprep.subr.mxu1 %v8319_v0 }
 0xc43   :  { %7702 = vmatmul.mubr.f32.vlgmr.msra.gmra.mrb[14].mxu1 %v6002_v24  ;;  %v6551_v24 = vand.u32 4294901760, %v6550_v44 }
 0xc44   :  { %7705 = vmatpush3.msra.mxu1 %v8883_v57  ;;  %7706 = vmatprep.mubr.msk.f32.mxu1 %vm8323_vm1, %v8319_v0 }
 0xc45   :  { %7709 = vmatprep.subr.mxu1 %v8319_v0 }
 0xc4b   :  { %7707 = vmatmul.mubr.f32.vlgmr.msra.gmra.mrb[14].mxu1 %v6003_v30  ;;  %v6556_v30 = vand.u32 4294901760, %v6555_v51 }
 0xc4c   :  { %7710 = vmatpush3.msra.mxu1 %v8900_v7  ;;  %7711 = vmatprep.mubr.msk.f32.mxu1 %vm8323_vm1, %v8319_v0 }
 0xc4d   :  { %7714 = vmatprep.subr.mxu1 %v8319_v0  ;;  %v6557_v34 = vsub.f32 %v6555_v51, %v6556_v30 }
 0xc4f   :  { %v6558_v17 = vand.u32 4294901760, %v6557_v34 }
 0xc53   :  { %7712 = vmatmul.mubr.f32.vlgmr.msra.gmra.mrb[14].mxu1 %v6001_v23 }
 0xc54   :  { %7715 = vmatpush3.msra.mxu1 %v8883_v57  ;;  %7716 = vmatprep.mubr.msk.f32.mxu1 %vm8323_vm1, %v8319_v0 }
 0xc5b   :  { %7717 = vmatmul.mubr.f32.vlgmr.msra.gmra.mrb[14].mxu1 %v6001_v23  ;;  %v6544_v23 = vand.u32 4294901760, %v6543_v63 }
 0xc5d   :  { %v7931_v25 = vpack.c.bf16 %v6551_v24, %v6544_v23 }
 0xc5f   :  { %7932 = vmatprep.subr.bf16.mxu0 %v7931_v25 }
 0xc87   :  { %v3577_v1 = vpop.xlane.xlu0 %3576 }
 0xc88   :  { %v3578_v33 = vmul.f32 0.03125, %v3577_v1  ;;  %v7935_v1 = vpack.c.bf16 %v6565_v45, %v6558_v17 }
 0xc8a   :  { %v3579_v62 = vadd.f32 1e-05, %v3578_v33  ;;  %v7939_v33 = vpack.c.bf16 %v6548_v10, %v6541_v42 }
 0xc8b   :  { %v3590_v37 = vpop.xlane.xlu0 %3589 }
 0xc8c   :  { %8202 = vrsqrt.f32 %v3579_v62  ;;  %v3591_v48 = vmul.f32 0.03125, %v3590_v37  ;;  %v7959_v62 = vpack.c.bf16 %v6563_v38, %v6556_v30 }
 0xc8e   :  { %v3592_v49 = vadd.f32 1e-05, %v3591_v48 }
 0xc8f   :  { %v6389_v7 = vpop.xlane.xlu0 %6388 }
 0xc90   :  { %8204 = vrsqrt.f32 %v3592_v49  ;;  %v6390_v52 = vmul.f32 0.03125, %v6389_v7 }
 0xc92   :  { %v6391_v53 = vadd.f32 1e-05, %v6390_v52 }
 0xc94   :  { %8206 = vrsqrt.f32 %v6391_v53 }
 0xc96   :  { %v8203_v55 = vpop.eup %8202 }
 0xc97   :  { %v3581_v31 = vmul.f32 %v8203_v55, %v8999_v2 }
 0xc99   :  { %v6419_v57 = vsel %vm86_vm0, %v3581_v31, 0 }
 0xc9a   :  { %v8205_v50 = vpop.eup %8204  ;;  %v9087_v0 = vand.u32 4294901760, %v6419_v57 }
 0xc9b   :  { %v3594_v47 = vmul.f32 %v8205_v50, %v9005_v9  ;;  %v7090_v50 = vld [vmem:[%s9181_s4] ss:$0 sm:$0xff]  ;;  %s8325_s4 = smov [#allocation8]  }
 0xc9c   :  { %v9091_v35 = vsub.f32 %v6419_v57, %v9087_v0  ;;  %s7077_s11 = sshll.u32 %s8325_s4, 4  ;;  %s7078_s11 = int_to_ptr.vmem [resolvable:$true] %s7077_s11 }
 0xc9d   :  { %v6422_v46 = vsel %vm86_vm0, %v3594_v47, 0  ;;  %s8284_s12 = scalar_lea.vmem %s7078_s11, 512  ;;  %p8289_p11 = scmp.lt.s32.totalorder %s7078_s11, %s7078_s11 }
 0xc9e   :  { %v8207_v59 = vpop.eup %8206  ;;  %v6501_v39 = vand.u32 4294901760, %v9091_v35  ;;  %v9095_v28 = vand.u32 4294901760, %v6422_v46  ;;  %p8285_p10 = scmp.ne.s32.totalorder %s7078_s11, %s8284_s12  ;;  %p8290_p12 = scmp.lt.s32.totalorder %s8284_s12, %s8284_s12 }
 0xc9f   :  { %v6393_v60 = vmul.f32 %v8207_v59, %v9010_v27 }
 0xca0   :  { %v6502_v61 = vsub.f32 %v9091_v35, %v6501_v39  ;;  %v9102_v2 = vsub.f32 %v6422_v46, %v9095_v28  ;;  %p8291_p13 = por %p8290_p12, %p8289_p11 }
 0xca1   :  { %v6425_v14 = vsel %vm86_vm0, %v6393_v60, 0 }
 0xca2   :  { %v6503_v3 = vand.u32 4294901760, %v6502_v61  ;;  %v6511_v4 = vand.u32 4294901760, %v9102_v2  ;;  %v9106_v5 = vand.u32 4294901760, %v6425_v14  ;;  %p8292_p0 = pnand %p8291_p13, %p8285_p10 }
 0xca4   :  { %7727 = vmatprep.mubr.f32.mxu0 %v6503_v3  ;;  %v6512_v6 = vsub.f32 %v9102_v2, %v6511_v4  ;;  %v9112_v8 = vsub.f32 %v6425_v14, %v9106_v5 }
 0xca6   :  { %v6513_v9 = vand.u32 4294901760, %v6512_v6  ;;  %v6521_v58 = vand.u32 4294901760, %v9112_v8 }
 0xca8   :  { %7728 = vmatmul.mubr.f32.vlgmr.msra.gmra.mrb[14].mxu0 %v6513_v9  ;;  %v6522_v11 = vsub.f32 %v9112_v8, %v6521_v58 }
 0xca9   :  { %7934 = vmatpush3.bf16.msra.mxu0 %v7931_v25 }
 0xcaa   :  { %v6523_v12 = vand.u32 4294901760, %v6522_v11  ;;  %7936 = vmatprep.subr.bf16.mxu0 %v7935_v1 }
 0xcac   :  { %7730 = vmatprep.mubr.f32.mxu0 %v6523_v12 }
 0xcad   :  { %7938 = vmatpush3.bf16.msra.mxu0 %v7935_v1 }
 0xcae   :  { %7940 = vmatprep.subr.bf16.mxu0 %v7939_v33 }
 0xd2e   :  { %v6377_v13 = vpop.f32.mrb[14].mxu1 }
 0xd2f   :  { %v7718_v56 = vpop.f32.mrb[15].mxu1  ;;  %v6394_v15 = vsel %vm86_vm0, %v6377_v13, 0.0 }
 0xd30   :  { %6395 = vadd.xlane.f32.xlu1 %v6394_v15 }
 0xdbd   :  { %v6396_v26 = vpop.xlane.xlu1 %6395 }
 0xdbe   :  { %v6397_v27 = vmul.f32 0.03125, %v6396_v26 }
 0xdc0   :  { %v6398_v32 = vsub.f32 %v6377_v13, %v6397_v27 }
 0xdc2   :  { %v6399_v40 = vmul.f32 %v6398_v32, %v6398_v32 }
 0xdc4   :  { %v6400_v41 = vsel %vm86_vm0, %v6399_v40, 0.0 }
 0xdc5   :  { %6401 = vadd.xlane.f32.xlu0 %v6400_v41 }
 0xe52   :  { %v6402_v29 = vpop.xlane.xlu0 %6401 }
 0xe53   :  { %v6403_v19 = vmul.f32 0.03125, %v6402_v29 }
 0xe55   :  { %v6404_v37 = vadd.f32 1e-05, %v6403_v19 }
 0xe57   :  { %8208 = vrsqrt.f32 %v6404_v37 }
 0xe61   :  { %v8209_v48 = vpop.eup %8208 }
 0xe62   :  { %v6406_v49 = vmul.f32 %v8209_v48, %v6398_v32 }
 0xe64   :  { %v6428_v7 = vsel %vm86_vm0, %v6406_v49, 0 }
 0xe65   :  { %v6529_v52 = vand.u32 4294901760, %v6428_v7 }
 0xe67   :  { %v6530_v53 = vsub.f32 %v6428_v7, %v6529_v52 }
 0xe69   :  { %v6531_v55 = vand.u32 4294901760, %v6530_v53 }
 0xe6b   :  { %v6532_v31 = vsub.f32 %v6530_v53, %v6531_v55 }
 0xe6d   :  { %v6533_v57 = vand.u32 4294901760, %v6532_v31 }
 0xe6f   :  { %7731 = vmatmul.mubr.f32.gmra.mrb[16].mxu0 %v6533_v57 }
 0xe70   :  { %7741 = vmatprep.mubr.f32.mxu0 %v9087_v0 }
 0xe73   :  { %7742 = vmatmul.mubr.f32.vlgmr.msra.gmra.mrb[14].mxu0 %v9095_v28 }
 0xe74   :  { %7744 = vmatprep.mubr.f32.mxu0 %v9106_v5  ;;  %7942 = vmatpush3.bf16.msra.mxu0 %v7939_v33 }
 0xe75   :  { %7944 = vmatprep.subr.bf16.mxu0 %v7943_v18 }
 0xe77   :  { %7745 = vmatmul.mubr.f32.gmra.mrb[16].mxu0 %v6529_v52 }
 0xe78   :  { %7946 = vmatpush3.bf16.msra.mxu0 %v7943_v18  ;;  %7755 = vmatprep.mubr.f32.mxu0 %v9091_v35 }
 0xe79   :  { %7948 = vmatprep.subr.bf16.mxu0 %v9046_v21 }
 0xe7b   :  { %7756 = vmatmul.mubr.f32.vlgmr.msra.gmra.mrb[14].mxu0 %v9102_v2 }
 0xe7c   :  { %7758 = vmatprep.mubr.f32.mxu0 %v9112_v8  ;;  %7950 = vmatpush3.bf16.msra.mxu0 %v9046_v21 }
 0xe7d   :  { %7952 = vmatprep.subr.bf16.mxu0 %v9052_v22 }
 0xe7f   :  { %7759 = vmatmul.mubr.f32.gmra.mrb[16].mxu0 %v6530_v53 }
 0xe80   :  { %7954 = vmatpush3.bf16.msra.mxu0 %v9052_v22  ;;  %7769 = vmatprep.mubr.f32.mxu0 %v6501_v39 }
 0xe81   :  { %7956 = vmatprep.subr.bf16.mxu0 %v7955_v16 }
 0xe83   :  { %7770 = vmatmul.mubr.f32.vlgmr.msra.gmra.mrb[14].mxu0 %v6511_v4 }
 0xe84   :  { %7772 = vmatprep.mubr.f32.mxu0 %v6521_v58  ;;  %7958 = vmatpush3.bf16.msra.mxu0 %v7955_v16 }
 0xe85   :  { %7960 = vmatprep.subr.bf16.mxu0 %v7959_v62 }
 0xe87   :  { %7773 = vmatmul.mubr.f32.gmra.mrb[16].mxu0 %v6531_v55 }
 0xe88   :  { %7962 = vmatpush3.bf16.msra.mxu0 %v7959_v62  ;;  %7783 = vmatprep.mubr.f32.mxu0 %v9087_v0 }
 0xe89   :  { %7964 = vmatprep.subr.bf16.mxu0 %v9046_v21 }
 0xe8b   :  { %7784 = vmatmul.mubr.f32.vlgmr.msra.gmra.mrb[14].mxu0 %v9095_v28 }
 0xe8c   :  { %7786 = vmatprep.mubr.f32.mxu0 %v9106_v5  ;;  %7966 = vmatpush3.bf16.msra.mxu0 %v9046_v21 }
 0xe8d   :  { %7968 = vmatprep.subr.bf16.mxu0 %v9052_v22 }
 0xe8f   :  { %7787 = vmatmul.mubr.f32.gmra.mrb[16].mxu0 %v6529_v52 }
 0xe90   :  { %7970 = vmatpush3.bf16.msra.mxu0 %v9052_v22  ;;  %7797 = vmatprep.mubr.f32.mxu0 %v9087_v0 }
 0xe93   :  { %7798 = vmatmul.mubr.f32.vlgmr.msra.gmra.mrb[14].mxu0 %v9095_v28 }
 0xe94   :  { %7800 = vmatprep.mubr.f32.mxu0 %v9106_v5 }
 0xe97   :  { %7801 = vmatmul.mubr.f32.gmra.mrb[16].mxu0 %v6529_v52 }
 0xf66   :  { %v7799_v47 = vpop.f32.mrb[14].mxu0 }
 0xf67   :  { %v7978_v35 = vadd.f32 %v7799_v47, %v7090_v50  ;;  %v7022_v46 = vpop.f32.mrb[15].mxu0 }
 0xf68   :  { %v7979_v21 = vadd.f32 %v7090_v50, %v7022_v46 }
 0xf69   :  { %v7049_v59 = vmin.f32 %v7978_v35, 0.0  ;;  %vm7045_vm5 = vcmp.gt.f32.partialorder %v7978_v35, 0.0 }
 0xf6a   :  { %v7048_v39 = vmin.f32 %v7979_v21, 0.0  ;;  %v7802_v60 = vpop.f32.mrb[16].mxu0  ;;  %vm7044_vm6 = vcmp.gt.f32.partialorder %v7979_v21, 0.0 }
 0xf6b   :  { %v7054_v61 = vmul.f32 1.442695, %v7049_v59  ;;  %v7980_v22 = vadd.f32 %v7802_v60, %v7090_v50  ;;  %v7034_v2 = vpop.f32.mrb[17].mxu0 }
 0xf6c   :  { %v7052_v0 = vmul.f32 1.442695, %v7048_v39  ;;  %v7981_v14 = vadd.f32 %v7090_v50, %v7034_v2 }
 0xf6d   :  { %8210 = vpow2.f32 %v7054_v61  ;;  %v7051_v28 = vmin.f32 %v7980_v22, 0.0  ;;  %vm7047_vm7 = vcmp.gt.f32.partialorder %v7980_v22, 0.0 }
 0xf6e   :  { %8212 = vpow2.f32 %v7052_v0  ;;  %v7050_v3 = vmin.f32 %v7981_v14, 0.0  ;;  %vm7046_vm8 = vcmp.gt.f32.partialorder %v7981_v14, 0.0 }
 0xf6f   :  { %v7058_v4 = vmul.f32 1.442695, %v7051_v28 }
 0xf70   :  { %v7056_v5 = vmul.f32 1.442695, %v7050_v3 }
 0xf71   :  { %8214 = vpow2.f32 %v7058_v4 }
 0xf72   :  { %8216 = vpow2.f32 %v7056_v5 }
 0xf77   :  { %v8211_v6 = vpop.eup %8210 }
 0xf78   :  { %v8213_v8 = vpop.eup %8212  ;;  %v7092_v9 = vadd.f32 -1.0, %v8211_v6 }
 0xf79   :  { %v7091_v58 = vadd.f32 -1.0, %v8213_v8 }
 0xf7a   :  { %v7065_v11 = vsel %vm7045_vm5, %v7978_v35, %v7092_v9 }
 0xf7b   :  { %v8215_v12 = vpop.eup %8214  ;;  %7069 = vst [vmem:[#allocation8 + $0x8] sm:$0xff] %v7065_v11  ;;  %v7064_v13 = vsel %vm7044_vm6, %v7979_v21, %v7091_v58 }
 0xf7c   :  { %v8217_v56 = vpop.eup %8216  ;;  %7068 = vst [vmem:[#allocation8] sm:$0xff] %v7064_v13  ;;  %v7094_v15 = vadd.f32 -1.0, %v8215_v12 }
 0xf7d   :  { %v7093_v26 = vadd.f32 -1.0, %v8217_v56 }
 0xf7e   :  { %v7067_v27 = vsel %vm7047_vm7, %v7980_v22, %v7094_v15 }
 0xf7f   :  { %7071 = vst [vmem:[#allocation8 + $0x18] sm:$0xff] %v7067_v27  ;;  %v7066_v32 = vsel %vm7046_vm8, %v7981_v14, %v7093_v26 }
 0xf80   :  { %7070 = vst [vmem:[#allocation8 + $0x10] sm:$0xff] %v7066_v32 }
 0xf81   :  { %8295 = shalt.err (!%p8292_p0)
}
 0xf82   :  { %s8296_s15 = scalar_lea.hbm %s9182_s5, 512 }
 0xf83   :  { %p8297_p1 = scmp.ne.s32.totalorder %s9182_s5, %s8296_s15  ;;  %p8300_p2 = scmp.lt.u32.totalorder %s8296_s15, %s9182_s5 }
 0xf85   :  { %p8302_p3 = pnand %p8300_p2, %p8297_p1 }
 0xf87   :  { %8305 = shalt.err (!%p8302_p3)
}
 0xf88   :  { %7083 = dma.vmem_to_hbm [thread:$0]  %s7078_s11, 512, %s9182_s5, [#allocation4], %s8316_s1, %s8316_s1, %s8317_s17  }
 0xf89   :  { %8310 = dma.done.wait [#allocation4], 512  }
 0xf8a   :  { %8311 = vsyncadd [#allocation4], 4294966784 }
 0xf8b   :  { %7087 = vsyncpa [#allocation3], 1 }
 0xf8c   :  { %7088 = vsyncpa [#allocation6], 1 }
 0xf8d   :  { %7089 = vsyncpa [#allocation4], 1 }

</bundles_post_ra>
